<compile_context>
chip_gen: v7x
topology: tpu7x:2x2x1
jax: 0.10.0
libtpu: 0.0.40
codegen_flags: <defaults>
</compile_context>

<pallas_src>
import numpy as np

import jax
import jax.numpy as jnp
from jax.experimental import pallas as pl
from jax.experimental.pallas import tpu as pltpu


def _harmonic_kernel(x_ref, w_ref, bias_ref, copy_ref, o_ref):
    """One row-tile of the grouped harmonic embedding.

    x_ref:    (tile_g, G*D)       G original rows packed per grouped row
    w_ref:    (G*D, G*out_dim)    block-diagonal scatter matrix (freqs folded in)
    bias_ref: (1, G*out_dim)      0 on sin / pass-through lanes, pi/2 on cos lanes
    copy_ref: (1, G*out_dim)      1 -> pass-through (copy x) lane, 0 -> trig lane
    o_ref:    (tile_g, G*out_dim)
    """
    x = x_ref[...].astype(jnp.float32)
    # e[r, j*out_dim + d*H + h] = x[r, j*D + d] * freq[h]; pass-through lanes get
    # 1.0 * x.  HIGHEST precision keeps the scaling (and the copied lanes) exact
    # in f32 so the sin/cos arguments match the reference.
    e = jnp.dot(x, w_ref[...],
                precision=jax.lax.Precision.HIGHEST,
                preferred_element_type=jnp.float32)
    # cos(t) == sin(t + pi/2): one transcendental per lane instead of two.
    s = jnp.sin(e + bias_ref[...])
    out = jnp.where(copy_ref[...] != 0, e, s)
    o_ref[...] = out.astype(o_ref.dtype)


_GROUP = 16  # original rows packed per grouped row -> lane-dense output stores


def _default_min_grid_steps() -> int:
    """>= 2 grid steps per TensorCore on multi-TC chips, 1 on single-TC chips."""
    try:
        kind = jax.devices()[0].device_kind.lower()
    except Exception:
        return 2
    single_tc = any(t in kind for t in ("v5e", "v5 lite", "v5lite", "v6e", "v6 lite"))
    return 1 if single_tc else 4


def harmonic_embedding(x, *, n_harmonic_functions: int = 6, omega_0: float = 1.0,
                       logspace: bool = True, append_input: bool = True,
                       out_dtype=None,
                       target_rows_per_step: int = 32768,
                       min_grid_steps=None,
                       vmem_block_budget_bytes: int = 24 * 1024 * 1024):
    """Pallas implementation of HarmonicEmbedding.forward.

    x: [..., D] float array.  Returns [..., D*(2*H + int(append_input))] with
    dtype promote_types(x.dtype, float32) unless `out_dtype` is overridden.
    """
    H = n_harmonic_functions
    orig_shape = x.shape
    D = orig_shape[-1]
    out_dim = D * (2 * H + int(append_input))
    if out_dtype is None:
        out_dtype = jnp.promote_types(x.dtype, jnp.float32)
    out_dtype = np.dtype(out_dtype)

    x2 = x.reshape(-1, D)
    N = x2.shape[0]
    if N == 0:
        return jnp.zeros((*orig_shape[:-1], out_dim), out_dtype)

    # ---- trace-time constants (numpy -> baked, no tiny device ops) ------------
    if logspace:
        freqs = 2.0 ** np.arange(H, dtype=np.float32)
    else:
        freqs = np.linspace(1.0, 2.0 ** (H - 1), H, dtype=np.float32)
    freqs = (freqs * omega_0).astype(np.float32)

    # Per-row scatter block wb: (D, out_dim)
    #   wb[d, d*H + h]        = freq[h]   (sin block)
    #   wb[d, D*H + d*H + h]  = freq[h]   (cos block)
    #   wb[d, 2*D*H + d]      = 1.0       (pass-through, if append_input)
    wb = np.zeros((D, out_dim), np.float32)
    for d in range(D):
        wb[d, d * H:(d + 1) * H] = freqs
        wb[d, D * H + d * H: D * H + (d + 1) * H] = freqs
        if append_input:
            wb[d, 2 * D * H + d] = 1.0

    blk_bias = np.zeros((out_dim,), np.float32)
    blk_bias[D * H:2 * D * H] = np.float32(np.pi / 2.0)   # cos = sin(. + pi/2)
    blk_copy = np.zeros((out_dim,), np.int32)
    if append_input:
        blk_copy[2 * D * H:] = 1

    G = _GROUP
    W = np.kron(np.eye(G, dtype=np.float32), wb)           # (G*D, G*out_dim)
    bias = np.tile(blk_bias, G).reshape(1, G * out_dim)
    copy_mask = np.tile(blk_copy, G).reshape(1, G * out_dim)

    # ---- always G=16: pad rows instead of falling back to narrow stores ------
    pad = (-N) % G
    if pad:
        x2 = jnp.concatenate([x2, jnp.zeros((pad, D), x2.dtype)], axis=0)
    Np = N + pad
    Ng = Np // G
    x_g = x2.reshape(Ng, G * D)            # free row-major reshape

    # ---- tile selection (big tiles, VMEM-budgeted, per-generation steps) ------
    if min_grid_steps is None:
        min_grid_steps = _default_min_grid_steps()
    in_isz = x_g.dtype.itemsize
    out_isz = out_dtype.itemsize
    grouped_row_bytes = G * D * in_isz + G * out_dim * out_isz
    vmem_cap = max(8, vmem_block_budget_bytes // (2 * grouped_row_bytes))
    tgt = max(8, target_rows_per_step // G)
    tgt = min(tgt, vmem_cap)

    align = 16 if out_isz < 4 else 8       # bf16 stores want 16-row sublane tiles
    if Ng <= tgt:
        tile_g = Ng                        # single full-extent block
    else:
        tile_g = min(tgt, pl.cdiv(Ng, min_grid_steps))
        tile_g = max(align, (tile_g // align) * align)
    num_steps = pl.cdiv(Ng, tile_g)        # partial last tile handled by masking

    out_g = pl.pallas_call(
        _harmonic_kernel,
        out_shape=jax.ShapeDtypeStruct((Ng, G * out_dim), out_dtype),
        grid_spec=pltpu.PrefetchScalarGridSpec(
            num_scalar_prefetch=0,
            grid=(num_steps,),
            in_specs=[
                pl.BlockSpec((tile_g, G * D), lambda i: (i, 0)),        # x rows
                pl.BlockSpec((G * D, G * out_dim), lambda i: (0, 0)),   # W (resident)
                pl.BlockSpec((1, G * out_dim), lambda i: (0, 0)),       # phase bias
                pl.BlockSpec((1, G * out_dim), lambda i: (0, 0)),       # copy mask
            ],
            out_specs=pl.BlockSpec((tile_g, G * out_dim), lambda i: (i, 0)),
        ),
        compiler_params=pltpu.CompilerParams(
            dimension_semantics=("parallel",),
            vmem_limit_bytes=32 * 1024 * 1024),
    )(x_g, jnp.asarray(W), jnp.asarray(bias), jnp.asarray(copy_mask))

    # Free reshape back; drop padded rows if any.
    out_flat = out_g.reshape(Np, out_dim)
    if pad:
        out_flat = out_flat[:N]
    return out_flat.reshape(*orig_shape[:-1], out_dim)


def harmonic_embedding_ref(x, *, n_harmonic_functions=6, omega_0=1.0,
                           logspace=True, append_input=True):
    H = n_harmonic_functions
    if logspace:
        freqs = 2.0 ** jnp.arange(H, dtype=jnp.float32)
    else:
        freqs = jnp.linspace(1.0, 2.0 ** (H - 1), H, dtype=jnp.float32)
    freqs = freqs * omega_0
    embed = (x[..., None] * freqs).reshape(*x.shape[:-1], -1)
    pieces = (jnp.sin(embed), jnp.cos(embed), x) if append_input else (
        jnp.sin(embed), jnp.cos(embed))
    return jnp.concatenate(pieces, axis=-1)


if __name__ == "__main__":
    key = jax.random.PRNGKey(0)
    # Batch of 3-D points (xyz): batch=2, seq=64 -> N=128 rows.
    x = jax.random.normal(key, (2, 64, 3), dtype=jnp.float32)

    out = harmonic_embedding(x, n_harmonic_functions=6, omega_0=1.0,
                             logspace=True, append_input=True)
    out = jax.block_until_ready(out)
    ref = harmonic_embedding_ref(x, n_harmonic_functions=6, omega_0=1.0,
                                 logspace=True, append_input=True)
    assert out.shape == (2, 64, 3 * (2 * 6 + 1)), out.shape
    assert jnp.allclose(out, ref, atol=1e-4, rtol=1e-4), (
        float(jnp.max(jnp.abs(out - ref))))

    # N = 35 (row-padding path), append_input=False, non-logspace, omega_0 != 1.
    x_small = jax.random.normal(jax.random.PRNGKey(1), (5, 7, 3), dtype=jnp.float32)
    out2 = jax.block_until_ready(
        harmonic_embedding(x_small, n_harmonic_functions=6, omega_0=0.5,
                           logspace=False, append_input=False))
    ref2 = harmonic_embedding_ref(x_small, n_harmonic_functions=6, omega_0=0.5,
                                  logspace=False, append_input=False)
    assert out2.shape == (5, 7, 3 * 2 * 6), out2.shape
    assert jnp.allclose(out2, ref2, atol=1e-4, rtol=1e-4), (
        float(jnp.max(jnp.abs(out2 - ref2))))

    print("KERNEL_OK")
</pallas_src>

<mosaic_0001>
module attributes {stable_mosaic.version = 11 : i64} {
  func.func @_harmonic_kernel(%arg0: i32, %arg1: memref<8x48xf32, #tpu.memory_space<vmem>>, %arg2: memref<48x624xf32, #tpu.memory_space<vmem>>, %arg3: memref<1x624xf32, #tpu.memory_space<vmem>>, %arg4: memref<1x624xi32, #tpu.memory_space<vmem>>, %arg5: memref<8x624xf32, #tpu.memory_space<vmem>>) attributes {dimension_semantics = [#tpu.dimension_semantics<parallel>], iteration_bounds = array<i64: 1>, scalar_prefetch = 0 : i64, scratch_operands = 0 : i64, tpu.core_type = #tpu.core_type<tc>, window_params = [{transform_indices = @transform_0, window_bounds = array<i64: 8, 48>}, {pipeline_mode = #tpu.pipeline_mode<synchronous>, transform_indices = @transform_1, window_bounds = array<i64: 48, 624>}, {pipeline_mode = #tpu.pipeline_mode<synchronous>, transform_indices = @transform_2, window_bounds = array<i64: 1, 624>}, {pipeline_mode = #tpu.pipeline_mode<synchronous>, transform_indices = @transform_3, window_bounds = array<i64: 1, 624>}, {transform_indices = @transform_4, window_bounds = array<i64: 8, 624>}]} {
    %c0 = arith.constant 0 : index
    %c0_0 = arith.constant 0 : index
    %0 = vector.load %arg1[%c0, %c0_0] : memref<8x48xf32, #tpu.memory_space<vmem>>, vector<8x48xf32>
    %c0_1 = arith.constant 0 : index
    %c0_2 = arith.constant 0 : index
    %1 = vector.load %arg2[%c0_1, %c0_2] : memref<48x624xf32, #tpu.memory_space<vmem>>, vector<48x624xf32>
    %cst = arith.constant dense<0.000000e+00> : vector<8x624xf32>
    %2 = tpu.matmul %0, %1, %cst {dimension_numbers = #tpu.dot_dimension_numbers<[1], [0], [0], [1], [0, 0, 1, 1], [], []>, precision = #tpu.contract_precision<fp32>} : vector<8x48xf32>, vector<48x624xf32>, vector<8x624xf32> -> vector<8x624xf32>
    %c0_3 = arith.constant 0 : index
    %c0_4 = arith.constant 0 : index
    %3 = vector.load %arg3[%c0_3, %c0_4] : memref<1x624xf32, #tpu.memory_space<vmem>>, vector<1x624xf32>
    %4 = vector.broadcast %3 : vector<1x624xf32> to vector<8x624xf32>
    %5 = arith.addf %2, %4 : vector<8x624xf32>
    %6 = math.sin %5 : vector<8x624xf32>
    %c0_5 = arith.constant 0 : index
    %c0_6 = arith.constant 0 : index
    %7 = vector.load %arg4[%c0_5, %c0_6] : memref<1x624xi32, #tpu.memory_space<vmem>>, vector<1x624xi32>
    %c0_i32 = arith.constant 0 : i32
    %8 = vector.broadcast %c0_i32 : i32 to vector<1x624xi32>
    %9 = arith.cmpi ne, %7, %8 : vector<1x624xi32>
    %10 = vector.shape_cast %9 : vector<1x624xi1> to vector<1x624xi1>
    %11 = vector.broadcast %10 : vector<1x624xi1> to vector<8x624xi1>
    %12 = arith.select %11, %2, %6 : vector<8x624xi1>, vector<8x624xf32>
    %c0_7 = arith.constant 0 : index
    %c0_8 = arith.constant 0 : index
    %13 = vector.load %arg5[%c0_7, %c0_8] : memref<8x624xf32, #tpu.memory_space<vmem>>, vector<8x624xf32>
    tpu.vector_store %arg5[%c0_7, %c0_8], %12 {strides = array<i32>} : memref<8x624xf32, #tpu.memory_space<vmem>>, vector<8x624xf32>,
    return
  }
  func.func @transform_0(%arg0: i32) -> (i32, i32) {
    %c0_i32 = arith.constant 0 : i32
    %c0_i32_0 = arith.constant 0 : i32
    return %arg0, %c0_i32 : i32, i32
  }
  func.func @transform_1(%arg0: i32) -> (i32, i32) {
    %c0_i32 = arith.constant 0 : i32
    %c0_i32_0 = arith.constant 0 : i32
    %c0_i32_1 = arith.constant 0 : i32
    return %c0_i32, %c0_i32_0 : i32, i32
  }
  func.func @transform_2(%arg0: i32) -> (i32, i32) {
    %c0_i32 = arith.constant 0 : i32
    %c0_i32_0 = arith.constant 0 : i32
    %c0_i32_1 = arith.constant 0 : i32
    return %c0_i32, %c0_i32_0 : i32, i32
  }
  func.func @transform_3(%arg0: i32) -> (i32, i32) {
    %c0_i32 = arith.constant 0 : i32
    %c0_i32_0 = arith.constant 0 : i32
    %c0_i32_1 = arith.constant 0 : i32
    return %c0_i32, %c0_i32_0 : i32, i32
  }
  func.func @transform_4(%arg0: i32) -> (i32, i32) {
    %c0_i32 = arith.constant 0 : i32
    %c0_i32_0 = arith.constant 0 : i32
    return %arg0, %c0_i32 : i32, i32
  }
}

</mosaic_0001>

<bundles_post_ra>
// kernel: tpu_custom_call.1
= control target key start
LH: loop header
LB: loop body
LE: loop exit
PB: predicated region body
PF: predicated region fallthrough
CT: control target
= control target key end

     0   :  { %9 = vsyncpa [#allocation3], 0  ;;  %s3736_s0 = inlined_call_operand.hbm [shape: f32[8,48], index: 0, kind: input, shape index: {}]   ;;  %s3737_s1 = inlined_call_operand.hbm [shape: f32[48,624], index: 1, kind: input, shape index: {}]   ;;  %s3738_s2 = inlined_call_operand.vmem [shape: f32[1,624], index: 2, kind: input, shape index: {}]   ;;  %s3739_s3 = inlined_call_operand.vmem [shape: s32[1,624], index: 3, kind: input, shape index: {}]   ;;  %s3740_s4 = inlined_call_operand.hbm [shape: f32[8,624], index: 4, kind: output, shape index: {}]  }
   0x1   :  { %10 = vsyncpa [#allocation6], 0 }
   0x2   :  { %11 = vsyncpa [#allocation4], 0  ;;  %s2894_s15 = smov [#allocation2]   ;;  %s2895_s17 = smov [#allocation5]  }
   0x3   :  { %s18_s16 = sshll.u32 %s2894_s15, 4  ;;  %s27_s18 = sshll.u32 %s2895_s17, 4  ;;  %s19_s16 = int_to_ptr.vmem [resolvable:$true] %s18_s16  ;;  %s2934_s18 = int_to_ptr.vmem [resolvable:$true] %s27_s18 }
   0x4   :  { %s2822_s21 = scalar_lea.hbm %s3736_s0, 128 }
   0x5   :  { %p2823_p0 = scmp.ne.s32.totalorder %s3736_s0, %s2822_s21  ;;  %p2826_p1 = scmp.lt.u32.totalorder %s2822_s21, %s3736_s0 }
   0x7   :  { %p2828_p2 = pnand %p2826_p1, %p2823_p0 }
   0x9   :  { %2831 = shalt.err (!%p2828_p2)
}
   0xa   :  { %s2832_s26 = scalar_lea.vmem %s19_s16, 128  ;;  %p2837_p4 = scmp.lt.s32.totalorder %s19_s16, %s19_s16 }
   0xb   :  { %p2833_p3 = scmp.ne.s32.totalorder %s19_s16, %s2832_s26  ;;  %p2838_p5 = scmp.lt.s32.totalorder %s2832_s26, %s2832_s26 }
   0xd   :  { %p2839_p6 = por %p2838_p5, %p2837_p4 }
   0xf   :  { %p2840_p7 = pnand %p2839_p6, %p2833_p3 }
  0x11   :  { %2843 = shalt.err (!%p2840_p7)
}
  0x12   :  { %21 = dma.hbm_to_vmem [thread:$0]  %s3736_s0, 128, %s19_s16, [#allocation3]  }
  0x13   :  { %s2844_s5 = scalar_lea.hbm %s3737_s1, 3840 }
  0x14   :  { %p2845_p8 = scmp.ne.s32.totalorder %s3737_s1, %s2844_s5  ;;  %p2848_p9 = scmp.lt.u32.totalorder %s2844_s5, %s3737_s1 }
  0x16   :  { %p2850_p10 = pnand %p2848_p9, %p2845_p8 }
  0x18   :  { %2853 = shalt.err (!%p2850_p10)
}
  0x19   :  { %s2854_s10 = scalar_lea.vmem %s2934_s18, 3840  ;;  %p2859_p12 = scmp.lt.s32.totalorder %s2934_s18, %s2934_s18 }
  0x1a   :  { %p2855_p11 = scmp.ne.s32.totalorder %s2934_s18, %s2854_s10  ;;  %p2860_p13 = scmp.lt.s32.totalorder %s2854_s10, %s2854_s10 }
  0x1c   :  { %p2861_p0 = por %p2860_p13, %p2859_p12 }
  0x1e   :  { %p2862_p1 = pnand %p2861_p0, %p2855_p11 }
  0x20   :  { %2865 = shalt.err (!%p2862_p1)
}
  0x21   :  { %s2896_s0 = smov 640   ;;  %s2897_s11 = smov 40  }
  0x22   :  { %33 = dma.hbm_to_vmem [thread:$0]  %s3737_s1, 3840, %s2934_s18, [#allocation6], %s2896_s0, %s2896_s0, %s2897_s11  }
  0x23   :  { %2888 = dma.done.wait [#allocation3], 128  }
  0x24   :  { %2889 = vsyncadd [#allocation3], 4294967168 }
  0x25   :  { %2890 = dma.done.wait [#allocation6], 3840  }
  0x26   :  { %2891 = vsyncadd [#allocation6], 4294963456  ;;  %v2898_v0 = vmov 0.0   ;;  %v46_v1 = vld [vmem:[#allocation5 + $0x8] sm:$0xff]  ;;  %v51_v2 = vld [vmem:[#allocation5 + $0x30] sm:$0xff]  ;;  %vm75_vm0 = vcmask 392192  }
  0x27   :  { %155 = vmatprep.mubr.f32.mxu1 %v2898_v0  ;;  %472 = vmatprep.mubr.f32.mxu0 %v2898_v0  ;;  %v45_v3 = vld [vmem:[#allocation5] sm:$0xff]  ;;  %v79_v4 = vand.u32 4294901760, %v46_v1  ;;  %v83_v5 = vand.u32 4294901760, %v51_v2  ;;  %v50_v6 = vld [vmem:[#allocation5 + $0x28] sm:$0xff]  ;;  %v56_v8 = vld [vmem:[#allocation5 + $0x58] sm:$0xff]  ;;  %vm2900_vm1 = vmmov 0  }
  0x28   :  { %v81_v7 = vand.u32 4294901760, %v45_v3  ;;  %v61_v9 = vld [vmem:[#allocation5 + $0x80] sm:$0xff]  ;;  %v85_v10 = vand.u32 4294901760, %v50_v6  ;;  %v87_v11 = vand.u32 4294901760, %v56_v8  ;;  %v55_v13 = vld [vmem:[#allocation5 + $0x50] sm:$0xff]  ;;  %v60_v14 = vld [vmem:[#allocation5 + $0x78] sm:$0xff] }
  0x29   :  { %v91_v12 = vand.u32 4294901760, %v61_v9  ;;  %v66_v15 = vld [vmem:[#allocation5 + $0xa8] sm:$0xff]  ;;  %v2967_v16 = vpack.c.bf16 %v83_v5, %v79_v4  ;;  %v2969_v17 = vsub.f32 %v46_v1, %v79_v4  ;;  %v2971_v18 = vsub.f32 %v51_v2, %v83_v5  ;;  %v71_v20 = vld [vmem:[#allocation5 + $0xd0] sm:$0xff]  ;;  %v65_v21 = vld [vmem:[#allocation5 + $0xa0] sm:$0xff] }
  0x2a   :  { %v2973_v19 = vsub.f32 %v45_v3, %v81_v7  ;;  %v70_v22 = vld [vmem:[#allocation5 + $0xc8] sm:$0xff]  ;;  %v2975_v23 = vpack.c.bf16 %v85_v10, %v81_v7  ;;  %v2977_v24 = vsub.f32 %v50_v6, %v85_v10  ;;  %v2981_v26 = vsub.f32 %v56_v8, %v87_v11  ;;  %v44_v39 = vld [vmem:[#allocation2] sm:$0xff] }
  0x2b   :  { %v2979_v25 = vpack.c.bf16 %v91_v12, %v87_v11  ;;  %2540 = vmatprep.subr.bf16.mxu1 %v2967_v16  ;;  %2576 = vmatprep.subr.bf16.mxu0 %v2967_v16  ;;  %v2985_v27 = vsub.f32 %v61_v9, %v91_v12  ;;  %v89_v28 = vand.u32 4294901760, %v55_v13  ;;  %v93_v29 = vand.u32 4294901760, %v60_v14 }
  0x2c   :  { %v95_v30 = vand.u32 4294901760, %v66_v15  ;;  %2542 = vmatpush1.bf16.msra.mxu1 %v2975_v23  ;;  %2578 = vmatpush1.bf16.msra.mxu0 %v2975_v23  ;;  %v99_v31 = vand.u32 4294901760, %v71_v20  ;;  %v97_v32 = vand.u32 4294901760, %v65_v21  ;;  %v101_v33 = vand.u32 4294901760, %v70_v22 }
  0x2d   :  { %v169_v34 = vand.u32 4294901760, %v2969_v17  ;;  %2544 = vmatprep.subr.bf16.mxu1 %v2979_v25  ;;  %2580 = vmatprep.subr.bf16.mxu0 %v2979_v25  ;;  %v2992_v35 = vpack.c.bf16 %v93_v29, %v89_v28  ;;  %v2994_v36 = vsub.f32 %v55_v13, %v89_v28  ;;  %v2996_v37 = vsub.f32 %v60_v14, %v93_v29 }
  0x2e   :  { %v181_v38 = vand.u32 4294901760, %v2971_v18  ;;  %v2999_v40 = vpack.c.bf16 %v99_v31, %v95_v30  ;;  %v3001_v41 = vsub.f32 %v66_v15, %v95_v30  ;;  %v3003_v42 = vsub.f32 %v71_v20, %v99_v31 }
  0x2f   :  { %v3005_v43 = vpack.c.bf16 %v101_v33, %v97_v32  ;;  %v3007_v44 = vsub.f32 %v65_v21, %v97_v32  ;;  %v3009_v45 = vsub.f32 %v70_v22, %v101_v33  ;;  %v170_v46 = vsub.f32 %v2969_v17, %v169_v34 }
  0x30   :  { %v182_v47 = vsub.f32 %v2971_v18, %v181_v38  ;;  %2546 = vmatpush1.bf16.msra.mxu1 %v2992_v35  ;;  %2582 = vmatpush1.bf16.msra.mxu0 %v2992_v35  ;;  %v2587_v48 = vpack.c.bf16 %v181_v38, %v169_v34  ;;  %v77_v49 = vsel %vm75_vm0, %v44_v39, 0  ;;  %v175_v50 = vand.u32 4294901760, %v2973_v19 }
  0x31   :  { %v187_v51 = vand.u32 4294901760, %v2977_v24  ;;  %2548 = vmatprep.subr.bf16.mxu1 %v2999_v40  ;;  %2584 = vmatprep.subr.bf16.mxu0 %v2999_v40  ;;  %v171_v52 = vand.u32 4294901760, %v170_v46  ;;  %v3020_v54 = vand.u32 4294901760, %v77_v49  ;;  %v193_v55 = vand.u32 4294901760, %v2981_v26 }
  0x32   :  { %v183_v53 = vand.u32 4294901760, %v182_v47  ;;  %v176_v56 = vsub.f32 %v2973_v19, %v175_v50  ;;  %v205_v59 = vand.u32 4294901760, %v2985_v27  ;;  %v199_v63 = vand.u32 4294901760, %v2994_v36 }
  0x33   :  { %v188_v57 = vsub.f32 %v2977_v24, %v187_v51  ;;  %v2589_v58 = vpack.c.bf16 %v187_v51, %v175_v50  ;;  %v3027_v61 = vsub.f32 %v77_v49, %v3020_v54  ;;  %v194_v62 = vsub.f32 %v2981_v26, %v193_v55 }
  0x34   :  { %v2551_v60 = vpack.c.bf16 %v183_v53, %v171_v52  ;;  %2550 = vmatpush1.bf16.msra.mxu1 %v3005_v43  ;;  %2586 = vmatpush1.bf16.msra.mxu0 %v3005_v43  ;;  %v177_v1 = vand.u32 4294901760, %v176_v56  ;;  %v206_v3 = vsub.f32 %v2985_v27, %v205_v59  ;;  %v2591_v4 = vpack.c.bf16 %v205_v59, %v193_v55  ;;  %v48_v52 = vld [vmem:[#allocation5 + $0x18] sm:$0xff]  ;;  %v53_v53 = vld [vmem:[#allocation5 + $0x40] sm:$0xff]  ;;  %v47_v55 = vld [vmem:[#allocation5 + $0x10] sm:$0xff] }
  0x35   :  { %v189_v2 = vand.u32 4294901760, %v188_v57  ;;  %2588 = vmatprep.subr.bf16.mxu0 %v2587_v48  ;;  %v3035_v5 = vand.u32 4294901760, %v3027_v61  ;;  %v195_v6 = vand.u32 4294901760, %v194_v62  ;;  %v200_v7 = vsub.f32 %v2994_v36, %v199_v63  ;;  %v52_v56 = vld [vmem:[#allocation5 + $0x38] sm:$0xff]  ;;  %v49_v57 = vld [vmem:[#allocation5 + $0x20] sm:$0xff]  ;;  %v58_v62 = vld [vmem:[#allocation5 + $0x68] sm:$0xff] }
  0x36   :  { %2552 = vmatprep.subr.bf16.mxu1 %v2551_v60  ;;  %v211_v8 = vand.u32 4294901760, %v2996_v37  ;;  %v207_v10 = vand.u32 4294901760, %v206_v3  ;;  %v217_v11 = vand.u32 4294901760, %v3001_v41  ;;  %v229_v12 = vand.u32 4294901760, %v3003_v42  ;;  %v54_v60 = vld [vmem:[#allocation5 + $0x48] sm:$0xff] }
  0x37   :  { %v2553_v9 = vpack.c.bf16 %v189_v2, %v177_v1  ;;  %v159_v13 = vsub.f32 %v3027_v61, %v3035_v5  ;;  %476 = vmatmul.mubr.f32.vlgmr.msra.gmra.mrb[0].mxu0 %v3035_v5  ;;  %v201_v14 = vand.u32 4294901760, %v200_v7  ;;  %v223_v32 = vand.u32 4294901760, %v3007_v44 }
  0x38   :  { %v212_v15 = vsub.f32 %v2996_v37, %v211_v8  ;;  %v2593_v20 = vpack.c.bf16 %v211_v8, %v199_v63  ;;  %2590 = vmatpush1.bf16.msra.mxu0 %v2589_v58  ;;  %v2555_v21 = vpack.c.bf16 %v207_v10, %v195_v6  ;;  %v218_v22 = vsub.f32 %v3001_v41, %v217_v11  ;;  %v63_v63 = vld [vmem:[#allocation5 + $0x90] sm:$0xff] }
  0x39   :  { %v230_v28 = vsub.f32 %v3003_v42, %v229_v12  ;;  %v2595_v29 = vpack.c.bf16 %v229_v12, %v217_v11  ;;  %v3047_v30 = vand.u32 4294901760, %v159_v13  ;;  %2592 = vmatprep.subr.bf16.mxu0 %v2591_v4  ;;  %v235_v33 = vand.u32 4294901760, %v3009_v45  ;;  %582 = vmatprep.mubr.f32.mxu0 %v2898_v0  ;;  %v68_v13 = vld [vmem:[#allocation5 + $0xb8] sm:$0xff] }
  0x3a   :  { %v213_v31 = vand.u32 4294901760, %v212_v15  ;;  %v219_v34 = vand.u32 4294901760, %v218_v22  ;;  %v224_v39 = vsub.f32 %v3007_v44, %v223_v32  ;;  %v2563_v59 = vpack.c.bf16 %v2971_v18, %v2969_v17 }
  0x3b   :  { %v231_v38 = vand.u32 4294901760, %v230_v28  ;;  %161 = vmatmul.mubr.f32.vlgmr.msra.gmra.mrb[0].mxu1 %v3047_v30  ;;  %v236_v46 = vsub.f32 %v3009_v45, %v235_v33  ;;  %v2597_v48 = vpack.c.bf16 %v235_v33, %v223_v32  ;;  %v674_v1 = vand.u32 4294901760, %v48_v52 }
  0x3c   :  { %2554 = vmatpush1.bf16.msra.mxu1 %v2553_v9  ;;  %v2557_v47 = vpack.c.bf16 %v213_v31, %v201_v14  ;;  %2594 = vmatpush1.bf16.msra.mxu0 %v2593_v20  ;;  %v225_v50 = vand.u32 4294901760, %v224_v39  ;;  %v678_v2 = vand.u32 4294901760, %v53_v53  ;;  %v676_v3 = vand.u32 4294901760, %v47_v55 }
  0x3d   :  { %2556 = vmatprep.subr.bf16.mxu1 %v2555_v21  ;;  %v2559_v49 = vpack.c.bf16 %v231_v38, %v219_v34  ;;  %2596 = vmatprep.subr.bf16.mxu0 %v2595_v29  ;;  %v237_v51 = vand.u32 4294901760, %v236_v46  ;;  %v680_v4 = vand.u32 4294901760, %v52_v56  ;;  %v2565_v6 = vpack.c.bf16 %v2977_v24, %v2973_v19  ;;  %v72_v38 = vld [vmem:[#allocation5 + $0xd8] sm:$0xff] }
  0x3e   :  { %291 = vmatprep.mubr.f32.mxu1 %v2898_v0  ;;  %v2567_v7 = vpack.c.bf16 %v2985_v27, %v2981_v26  ;;  %v2569_v8 = vpack.c.bf16 %v2996_v37, %v2994_v36  ;;  %v1270_v17 = vand.u32 4294901760, %v49_v57  ;;  %v1273_v18 = vand.u32 4294901760, %v54_v60  ;;  %v57_v26 = vld [vmem:[#allocation5 + $0x60] sm:$0xff]  ;;  %v62_v27 = vld [vmem:[#allocation5 + $0x88] sm:$0xff]  ;;  %v59_v36 = vld [vmem:[#allocation5 + $0x70] sm:$0xff] }
  0x3f   :  { %v2561_v58 = vpack.c.bf16 %v237_v51, %v225_v50  ;;  %v682_v9 = vand.u32 4294901760, %v58_v62  ;;  %v686_v10 = vand.u32 4294901760, %v63_v63  ;;  %v2573_v19 = vpack.c.bf16 %v3009_v45, %v3007_v44  ;;  %v74_v50 = vld [vmem:[#allocation5 + $0xe8] sm:$0xff] }
  0x40   :  { %2558 = vmatpush1.bf16.msra.mxu1 %v2557_v47  ;;  %2598 = vmatpush1.bf16.msra.mxu0 %v2597_v48  ;;  %v3071_v24 = vsub.f32 %v48_v52, %v674_v1  ;;  %v3074_v37 = vpack.c.bf16 %v678_v2, %v674_v1  ;;  %v3076_v11 = vsub.f32 %v53_v53, %v678_v2  ;;  %v684_v28 = vand.u32 4294901760, %v57_v26 }
  0x41   :  { %2560 = vmatprep.subr.bf16.mxu1 %v2559_v49  ;;  %2600 = vmatprep.subr.bf16.mxu0 %v2967_v16  ;;  %v2571_v16 = vpack.c.bf16 %v3003_v42, %v3001_v41  ;;  %v3078_v12 = vpack.c.bf16 %v680_v4, %v676_v3  ;;  %v73_v41 = vld [vmem:[#allocation5 + $0xe0] sm:$0xff]  ;;  %v3081_v42 = vsub.f32 %v47_v55, %v676_v3  ;;  %v688_v29 = vand.u32 4294901760, %v62_v27 }
  0x42   :  { %v3083_v14 = vsub.f32 %v52_v56, %v680_v4  ;;  %v3085_v15 = vsub.f32 %v49_v57, %v1270_v17  ;;  %v3087_v20 = vsub.f32 %v54_v60, %v1273_v18  ;;  %v3090_v21 = vpack.c.bf16 %v1273_v18, %v1270_v17  ;;  %v69_v49 = vld [vmem:[#allocation5 + $0xc0] sm:$0xff] }
  0x43   :  { %584 = vmatmul.mubr.f32.vlgmr.msra.gmra.mrb[0].mxu0 %v3020_v54  ;;  %v3092_v22 = vpack.c.bf16 %v686_v10, %v682_v9  ;;  %v1276_v31 = vand.u32 4294901760, %v59_v36  ;;  %v690_v33 = vand.u32 4294901760, %v68_v13  ;;  %v694_v34 = vand.u32 4294901760, %v73_v41 }
  0x44   :  { %2562 = vmatpush1.bf16.msra.mxu1 %v2561_v58  ;;  %2602 = vmatpush1.bf16.msra.mxu0 %v2975_v23  ;;  %v64_v23 = vld [vmem:[#allocation5 + $0x98] sm:$0xff]  ;;  %v3096_v39 = vsub.f32 %v58_v62, %v682_v9  ;;  %v3098_v46 = vsub.f32 %v63_v63, %v686_v10  ;;  %v3100_v47 = vsub.f32 %v57_v26, %v684_v28  ;;  %v776_v51 = vand.u32 4294901760, %v3076_v11 }
  0x45   :  { %2564 = vmatprep.subr.bf16.mxu1 %v2563_v59  ;;  %2604 = vmatprep.subr.bf16.mxu0 %v2979_v25  ;;  %v67_v25 = vld [vmem:[#allocation5 + $0xb0] sm:$0xff]  ;;  %v1279_v32 = vand.u32 4294901760, %v64_v23  ;;  %v1353_v52 = vand.u32 4294901760, %v3085_v15  ;;  %v1360_v53 = vand.u32 4294901760, %v3087_v20  ;;  %v3109_v55 = vsub.f32 %v62_v27, %v688_v29 }
  0x46   :  { %666 = vmatprep.mubr.f32.mxu0 %v2898_v0  ;;  %v692_v48 = vand.u32 4294901760, %v67_v25  ;;  %v3111_v56 = vsub.f32 %v59_v36, %v1276_v31  ;;  %v696_v57 = vand.u32 4294901760, %v72_v38  ;;  %v3118_v60 = vpack.c.bf16 %v694_v34, %v690_v33 }
  0x47   :  { %293 = vmatmul.mubr.f32.vlgmr.msra.gmra.mrb[0].mxu1 %v3020_v54  ;;  %v3114_v58 = vpack.c.bf16 %v1279_v32, %v1276_v31  ;;  %v3116_v59 = vsub.f32 %v64_v23, %v1279_v32  ;;  %v2899_v62 = vmov 0.0|0.0   ;;  %v1282_v63 = vand.u32 4294901760, %v69_v49 }
  0x48   :  { %2566 = vmatpush1.bf16.msra.mxu1 %v2565_v6  ;;  %2606 = vmatpush1.bf16.msra.mxu0 %v2992_v35  ;;  %v764_v35 = vand.u32 4294901760, %v3071_v24  ;;  %v1285_v1 = vand.u32 4294901760, %v74_v50  ;;  %v770_v2 = vand.u32 4294901760, %v3081_v42  ;;  %v782_v3 = vand.u32 4294901760, %v3083_v14 }
  0x49   :  { %2568 = vmatprep.subr.bf16.mxu1 %v2567_v7  ;;  %2608 = vmatprep.subr.bf16.mxu0 %v2999_v40  ;;  %v3107_v40 = vpack.c.bf16 %v688_v29, %v684_v28  ;;  %v777_v4 = vsub.f32 %v3076_v11, %v776_v51  ;;  %v1354_v6 = vsub.f32 %v3085_v15, %v1353_v52  ;;  %v3744_v9 = vand.u32 4294901760, %v3111_v56 }
  0x4a   :  { %387 = vmatprep.mubr.f32.mxu1 %v2898_v0  ;;  %v1361_v7 = vsub.f32 %v3087_v20, %v1360_v53  ;;  %v3138_v17 = vsub.f32 %v73_v41, %v694_v34  ;;  %v3140_v18 = vpack.c.bf16 %v696_v57, %v692_v48  ;;  %v3147_v10 = vsub.f32 %v67_v25, %v692_v48 }
  0x4b   :  { %v3151_v26 = vsub.f32 %v74_v50, %v1285_v1  ;;  %v3742_v27 = vand.u32 4294901760, %v3096_v39  ;;  %v771_v36 = vsub.f32 %v3081_v42, %v770_v2  ;;  %v783_v44 = vsub.f32 %v3083_v14, %v782_v3 }
  0x4c   :  { %2570 = vmatpush1.bf16.msra.mxu1 %v2569_v8  ;;  %2610 = vmatpush1.bf16.msra.mxu0 %v3005_v43  ;;  %v765_v43 = vsub.f32 %v3071_v24, %v764_v35  ;;  %v3136_v8 = vsub.f32 %v68_v13, %v690_v33  ;;  %v3741_v45 = vand.u32 4294901760, %v3098_v46  ;;  %v778_v13 = vand.u32 4294901760, %v777_v4 }
  0x4d   :  { %2572 = vmatprep.subr.bf16.mxu1 %v2571_v16  ;;  %2683 = vmatprep.subr.bf16.mxu0 %v2899_v62  ;;  %v3149_v16 = vsub.f32 %v69_v49, %v1282_v63  ;;  %v1355_v41 = vand.u32 4294901760, %v1354_v6  ;;  %v1362_v25 = vand.u32 4294901760, %v1361_v7  ;;  %v3167_v28 = vsub.f32 %v72_v38, %v696_v57 }
  0x4e   :  { %v766_v23 = vand.u32 4294901760, %v765_v43  ;;  %v3749_v29 = vand.u32 4294901760, %v3100_v47  ;;  %v3746_v31 = vand.u32 4294901760, %v3109_v55  ;;  %v1368_v32 = vsub.f32 %v3111_v56, %v3744_v9 }
  0x4f   :  { %668 = vmatmul.mubr.f32.vlgmr.msra.gmra.mrb[0].mxu0 %v3020_v54  ;;  %v3176_v33 = vpack.c.bf16 %v1285_v1, %v1282_v63  ;;  %v789_v34 = vsub.f32 %v3096_v39, %v3742_v27  ;;  %v3745_v48 = vand.u32 4294901760, %v3149_v16  ;;  %v801_v49 = vsub.f32 %v3098_v46, %v3741_v45 }
  0x50   :  { %2574 = vmatpush1.bf16.msra.mxu1 %v2573_v19  ;;  %2685 = vmatpush3.bf16.msra.mxu0 %v3090_v21  ;;  %v3743_v19 = vand.u32 4294901760, %v3116_v59  ;;  %v3748_v50 = vand.u32 4294901760, %v3136_v8  ;;  %v824_v57 = vand.u32 4294901760, %v3138_v17  ;;  %v3747_v63 = vand.u32 4294901760, %v3151_v26 }
  0x51   :  { %2612 = vmatprep.subr.bf16.mxu1 %v3074_v37  ;;  %2686 = vmatprep.subr.bf16.mxu0 %v2899_v62  ;;  %v2623_v1 = vpack.c.bf16 %v778_v13, %v766_v23  ;;  %v772_v43 = vand.u32 4294901760, %v771_v36  ;;  %v784_v4 = vand.u32 4294901760, %v783_v44  ;;  %v2693_v6 = vpack.c.bf16 %v1362_v25, %v1355_v41 }
  0x52   :  { %2461 = vmatprep.mubr.msk.f32.mxu0 %vm2900_vm1, %v2898_v0  ;;  %v1375_v38 = vsub.f32 %v3116_v59, %v3743_v19  ;;  %v795_v7 = vsub.f32 %v3100_v47, %v3749_v29  ;;  %v807_v45 = vsub.f32 %v3109_v55, %v3746_v31  ;;  %v1369_v27 = vand.u32 4294901760, %v1368_v32 }
  0x53   :  { %390 = vmatmul.mubr.f32.vlgmr.msra.gmra.mrb[0].mxu1 %v3027_v61  ;;  %v818_v19 = vand.u32 4294901760, %v3147_v10  ;;  %v830_v36 = vand.u32 4294901760, %v3167_v28  ;;  %v1382_v44 = vsub.f32 %v3149_v16, %v3745_v48  ;;  %v1389_v23 = vsub.f32 %v3151_v26, %v3747_v63 }
  0x54   :  { %2614 = vmatpush1.bf16.msra.mxu1 %v3078_v12  ;;  %2688 = vmatpush3.bf16.msra.mxu0 %v3114_v58  ;;  %v1376_v9 = vand.u32 4294901760, %v1375_v38  ;;  %v790_v13 = vand.u32 4294901760, %v789_v34  ;;  %v802_v41 = vand.u32 4294901760, %v801_v49  ;;  %v813_v25 = vsub.f32 %v3136_v8, %v3748_v50 }
  0x55   :  { %2616 = vmatprep.subr.bf16.mxu1 %v3092_v22  ;;  %2689 = vmatprep.subr.bf16.mxu0 %v2899_v62  ;;  %v825_v32 = vsub.f32 %v3138_v17, %v824_v57  ;;  %v2625_v38 = vpack.c.bf16 %v784_v4, %v772_v43  ;;  %v796_v48 = vand.u32 4294901760, %v795_v7  ;;  %v808_v31 = vand.u32 4294901760, %v807_v45 }
  0x56   :  { %750 = vmatprep.mubr.f32.mxu1 %v2898_v0  ;;  %v819_v63 = vsub.f32 %v3147_v10, %v818_v19  ;;  %v2696_v34 = vpack.c.bf16 %v1376_v9, %v1369_v27  ;;  %v831_v49 = vsub.f32 %v3167_v28, %v830_v36  ;;  %v1383_v50 = vand.u32 4294901760, %v1382_v44 }
  0x57   :  { %v1390_v29 = vand.u32 4294901760, %v1389_v23  ;;  %v2627_v43 = vpack.c.bf16 %v802_v41, %v790_v13  ;;  %v814_v4 = vand.u32 4294901760, %v813_v25  ;;  %v826_v45 = vand.u32 4294901760, %v825_v32 }
  0x58   :  { %2618 = vmatpush1.bf16.msra.mxu1 %v3107_v40  ;;  %2691 = vmatpush3.bf16.msra.mxu0 %v3176_v33  ;;  %v820_v9 = vand.u32 4294901760, %v819_v63  ;;  %v832_v27 = vand.u32 4294901760, %v831_v49  ;;  %v2702_v23 = vpack.c.bf16 %v3087_v20, %v3085_v15  ;;  %v2708_v63 = vpack.c.bf16 %v3151_v26, %v3149_v16 }
  0x59   :  { %2620 = vmatprep.subr.bf16.mxu1 %v3118_v60  ;;  %2692 = vmatprep.subr.bf16.mxu0 %v2899_v62  ;;  %v2699_v7 = vpack.c.bf16 %v1390_v29, %v1383_v50  ;;  %v2631_v44 = vpack.c.bf16 %v826_v45, %v814_v4  ;;  %v2637_v29 = vpack.c.bf16 %v3083_v14, %v3081_v42  ;;  %v3750_v20 = vand.u32 4294901760, %v3111_v56 }
  0x5a   :  { %v2641_v50 = vpack.c.bf16 %v3109_v55, %v3100_v47  ;;  %v2643_v13 = vpack.c.bf16 %v3138_v17, %v3136_v8  ;;  %v2645_v41 = vpack.c.bf16 %v3167_v28, %v3147_v10  ;;  %v2720_v25 = vpack.c.bf16 %v1360_v53, %v1353_v52 }
  0x5b   :  { %2462 = vmatmul.mubr.f32.vlgmr.msra.gmra.mrb[2].mxu0 %v3047_v30  ;;  %v2661_v15 = vpack.c.bf16 %v782_v3, %v770_v2  ;;  %v3751_v52 = vand.u32 4294901760, %v3116_v59  ;;  %v3754_v42 = vand.u32 4294901760, %v3100_v47  ;;  %v3755_v14 = vand.u32 4294901760, %v3109_v55 }
  0x5c   :  { %2622 = vmatpush1.bf16.msra.mxu1 %v3140_v18  ;;  %2694 = vmatpush3.bf16.msra.mxu0 %v2693_v6  ;;  %v2629_v6 = vpack.c.bf16 %v808_v31, %v796_v48  ;;  %v2705_v31 = vpack.c.bf16 %v3116_v59, %v3111_v56  ;;  %v2639_v48 = vpack.c.bf16 %v3098_v46, %v3096_v39  ;;  %v3756_v56 = vand.u32 4294901760, %v3149_v16 }
  0x5d   :  { %2624 = vmatprep.subr.bf16.mxu1 %v2623_v1  ;;  %2695 = vmatprep.subr.bf16.mxu0 %v2899_v62  ;;  %v2633_v1 = vpack.c.bf16 %v832_v27, %v820_v9  ;;  %v2665_v53 = vpack.c.bf16 %v3755_v14, %v3754_v42  ;;  %v3758_v59 = vand.u32 4294901760, %v3136_v8 }
  0x5e   :  { %2476 = vmatprep.mubr.msk.f32.mxu0 %vm2900_vm1, %v2898_v0 }
  0x5f   :  { %756 = vmatmul.mubr.f32.vlgmr.msra.gmra.mrb[2].mxu1 %v3047_v30  ;;  %v2635_v30 = vpack.c.bf16 %v3076_v11, %v3071_v24  ;;  %v2723_v24 = vpack.c.bf16 %v3751_v52, %v3750_v20  ;;  %v3752_v11 = vand.u32 4294901760, %v3096_v39  ;;  %v3757_v39 = vand.u32 4294901760, %v3151_v26 }
  0x60   :  { %2626 = vmatpush1.bf16.msra.mxu1 %v2625_v38  ;;  %2697 = vmatpush3.bf16.msra.mxu0 %v2696_v34  ;;  %v2667_v2 = vpack.c.bf16 %v824_v57, %v3758_v59 }
  0x61   :  { %2628 = vmatprep.subr.bf16.mxu1 %v2627_v43  ;;  %2698 = vmatprep.subr.bf16.mxu0 %v2899_v62 }
  0x62   :  { %886 = vmatprep.mubr.f32.mxu1 %v2898_v0 }
  0x64   :  { %2630 = vmatpush1.bf16.msra.mxu1 %v2629_v6  ;;  %2700 = vmatpush3.bf16.msra.mxu0 %v2699_v7 }
  0x65   :  { %2632 = vmatprep.subr.bf16.mxu1 %v2631_v44  ;;  %2701 = vmatprep.subr.bf16.mxu0 %v2899_v62  ;;  %v2901_v44 = vmov 683565275  }
  0x67   :  { %2477 = vmatmul.mubr.f32.vlgmr.msra.gmra.mrb[2].mxu0 %v3020_v54 }
  0x68   :  { %2634 = vmatpush1.bf16.msra.mxu1 %v2633_v1  ;;  %2703 = vmatpush3.bf16.msra.mxu0 %v2702_v23 }
  0x69   :  { %2636 = vmatprep.subr.bf16.mxu1 %v2635_v30  ;;  %2704 = vmatprep.subr.bf16.mxu0 %v2899_v62 }
  0x6a   :  { %2491 = vmatprep.mubr.msk.f32.mxu0 %vm2900_vm1, %v2898_v0 }
  0x6b   :  { %888 = vmatmul.mubr.f32.vlgmr.msra.gmra.mrb[2].mxu1 %v3020_v54 }
  0x6c   :  { %2638 = vmatpush1.bf16.msra.mxu1 %v2637_v29  ;;  %2706 = vmatpush3.bf16.msra.mxu0 %v2705_v31  ;;  %v2902_v29 = vmov 2475754826  }
  0x6d   :  { %2640 = vmatprep.subr.bf16.mxu1 %v2639_v48  ;;  %2707 = vmatprep.subr.bf16.mxu0 %v2899_v62  ;;  %v2903_v48 = vmov 2131351028  }
  0x6e   :  { %982 = vmatprep.mubr.f32.mxu1 %v2898_v0 }
  0x70   :  { %2642 = vmatpush1.bf16.msra.mxu1 %v2641_v50  ;;  %2709 = vmatpush3.bf16.msra.mxu0 %v2708_v63  ;;  %v2904_v63 = vmov 2102212464  }
  0x71   :  { %2644 = vmatprep.subr.bf16.mxu1 %v2643_v13  ;;  %2710 = vmatprep.subr.bf16.mxu0 %v2899_v62 }
  0x73   :  { %2492 = vmatmul.mubr.f32.vlgmr.msra.gmra.mrb[2].mxu0 %v3027_v61 }
  0x74   :  { %2646 = vmatpush1.bf16.msra.mxu1 %v2645_v41  ;;  %2712 = vmatpush3.bf16.msra.mxu0 %v3090_v21  ;;  %v2905_v41 = vmov 920167782  }
  0x75   :  { %2648 = vmatprep.subr.bf16.mxu1 %v3074_v37  ;;  %2713 = vmatprep.subr.bf16.mxu0 %v2899_v62 }
  0x76   :  { %2506 = vmatprep.mubr.msk.f32.mxu0 %vm2900_vm1, %v2898_v0 }
  0x77   :  { %985 = vmatmul.mubr.f32.vlgmr.msra.gmra.mrb[2].mxu1 %v3027_v61  ;;  %v2659_v61 = vpack.c.bf16 %v776_v51, %v764_v35  ;;  %v3753_v35 = vand.u32 4294901760, %v3098_v46  ;;  %v2726_v46 = vpack.c.bf16 %v3757_v39, %v3756_v56 }
  0x78   :  { %2650 = vmatpush1.bf16.msra.mxu1 %v3078_v12  ;;  %2715 = vmatpush3.bf16.msra.mxu0 %v3114_v58 }
  0x79   :  { %2652 = vmatprep.subr.bf16.mxu1 %v3092_v22  ;;  %2716 = vmatprep.subr.bf16.mxu0 %v2899_v62  ;;  %v2663_v51 = vpack.c.bf16 %v3753_v35, %v3752_v11  ;;  %v2906_v11 = vmov 1326507024  }
  0x7a   :  { %1067 = vmatprep.mubr.f32.mxu1 %v2898_v0 }
  0x7c   :  { %2654 = vmatpush1.bf16.msra.mxu1 %v3107_v40  ;;  %2718 = vmatpush3.bf16.msra.mxu0 %v3176_v33 }
  0x7d   :  { %2656 = vmatprep.subr.bf16.mxu1 %v3118_v60  ;;  %2719 = vmatprep.subr.bf16.mxu0 %v2899_v62 }
  0x7f   :  { %2507 = vmatmul.mubr.f32.vlgmr.msra.gmra.mrb[2].mxu0 %v3035_v5 }
  0x80   :  { %2658 = vmatpush1.bf16.msra.mxu1 %v3140_v18  ;;  %2721 = vmatpush3.bf16.msra.mxu0 %v2720_v25 }
  0x81   :  { %2660 = vmatprep.subr.bf16.mxu1 %v2659_v61  ;;  %2722 = vmatprep.subr.bf16.mxu0 %v2899_v62 }
  0x82   :  { %2521 = vmatprep.mubr.msk.f32.mxu0 %vm2900_vm1, %v2898_v0 }
  0x83   :  { %1071 = vmatmul.mubr.f32.vlgmr.msra.gmra.mrb[2].mxu1 %v3035_v5  ;;  %v2669_v5 = vpack.c.bf16 %v830_v36, %v818_v19 }
  0x84   :  { %2662 = vmatpush1.bf16.msra.mxu1 %v2661_v15  ;;  %2724 = vmatpush3.bf16.msra.mxu0 %v2723_v24 }
  0x85   :  { %2664 = vmatprep.subr.bf16.mxu1 %v2663_v51  ;;  %2725 = vmatprep.subr.bf16.mxu0 %v2899_v62 }
  0x86   :  { %1177 = vmatprep.mubr.f32.mxu1 %v2898_v0 }
  0x88   :  { %2666 = vmatpush1.bf16.msra.mxu1 %v2665_v53  ;;  %2727 = vmatpush3.bf16.msra.mxu0 %v2726_v46 }
  0x89   :  { %2668 = vmatprep.subr.bf16.mxu1 %v2667_v2  ;;  %2728 = vmatprep.subr.bf16.mxu0 %v2899_v62 }
  0x8b   :  { %2522 = vmatmul.mubr.f32.vlgmr.msra.gmra.mrb[2].mxu0 %v3020_v54 }
  0x8c   :  { %2670 = vmatpush1.bf16.msra.mxu1 %v2669_v5  ;;  %2730 = vmatpush3.bf16.msra.mxu0 %v3090_v21 }
  0x8d   :  { %2672 = vmatprep.subr.bf16.mxu1 %v3074_v37  ;;  %2731 = vmatprep.subr.bf16.mxu0 %v2899_v62  ;;  %v1782_v37 = vlaneseq }
  0x8e   :  { %2536 = vmatprep.mubr.msk.f32.mxu0 %vm2900_vm1, %v2898_v0 }
  0x8f   :  { %1179 = vmatmul.mubr.f32.vlgmr.msra.gmra.mrb[2].mxu1 %v3020_v54 }
  0x90   :  { %2674 = vmatpush1.bf16.msra.mxu1 %v3078_v12  ;;  %2733 = vmatpush3.bf16.msra.mxu0 %v3114_v58  ;;  %v3338_v12 = vshrl.u32 %v1782_v37, 7 }
  0x91   :  { %2676 = vmatprep.subr.bf16.mxu1 %v3092_v22  ;;  %2734 = vmatprep.subr.bf16.mxu0 %v2899_v62 }
  0x92   :  { %1261 = vmatprep.mubr.f32.mxu1 %v2898_v0  ;;  %v1784_v21 = vsub.s32 0, %v3338_v12  ;;  %v3344_v0 = vld [vmem:[%s3738_s2] sm:$0x1f]  ;;  %v1788_v47 = vsub.s32 1, %v3338_v12 }
  0x94   :  { %2678 = vmatpush1.bf16.msra.mxu1 %v3107_v40  ;;  %2736 = vmatpush3.bf16.msra.mxu0 %v3176_v33  ;;  %v1785_v55 = vrot.slane %v3344_v0, %v1784_v21 }
  0x95   :  { %2680 = vmatprep.subr.bf16.mxu1 %v3118_v60 }
  0x97   :  { %2537 = vmatmul.mubr.f32.vlgmr.msra.gmra.mrb[2].mxu0 %v3020_v54 }
  0x98   :  { %2682 = vmatpush1.bf16.msra.mxu1 %v3140_v18 }
  0x9b   :  { %1263 = vmatmul.mubr.f32.vlgmr.msra.gmra.mrb[2].mxu1 %v3020_v54  ;;  %v1789_v54 = vrot.slane %v3344_v0, %v1788_v47 }
 0x122   :  { %v669_v22 = vpop.f32.mrb[0].mxu0 }
 0x123   :  { %v671_v40 = vpop.f32.mrb[1].mxu0 }
 0x126   :  { %v391_v58 = vpop.f32.mrb[0].mxu1 }
 0x127   :  { %v3353_v60 = vadd.f32 %v669_v22, %v391_v58  ;;  %v393_v62 = vpop.f32.mrb[1].mxu1 }
 0x128   :  { %v3355_v3 = vadd.f32 %v671_v40, %v393_v62 }
 0x129   :  { %v3358_v8 = vadd.f32 %v3353_v60, %v1785_v55 }
 0x12a   :  { %v3361_v17 = vadd.f32 %v3355_v3, %v1789_v54 }
 0x12b   :  { %v1812_v18 = vand.u32 2147483647, %v3358_v8  ;;  %v1815_v10 = vand.u32 2139095040, %v3358_v8  ;;  %vm1814_vm1 = vcmp.lt.s32.totalorder %v3358_v8, 0 }
 0x12c   :  { %v1919_v16 = vand.u32 2139095040, %v3361_v17  ;;  %v1916_v28 = vand.u32 2147483647, %v3361_v17 }
 0x12d   :  { %v1816_v26 = vshrl.u32 %v1815_v10, 23  ;;  %v1819_v19 = vand.u32 8388607, %v1812_v18 }
 0x12e   :  { %v1920_v33 = vshrl.u32 %v1919_v16, 23  ;;  %v3371_v34 = vand.u32 8388607, %v1916_v28 }
 0x12f   :  { %v2387_v57 = vadd.s32 4294967169, %v1816_v26  ;;  %v1820_v38 = vor.u32 8388608, %v1819_v19 }
 0x130   :  { %v2391_v36 = vadd.s32 4294967169, %v1920_v33  ;;  %v1924_v27 = vor.u32 8388608, %v3371_v34 }
 0x131   :  { %v1822_v32 = vadd.s32 1, %v2387_v57  ;;  %v3373_v9 = vshll.u32 %v1820_v38, 8 }
 0x132   :  { %v1926_v49 = vadd.s32 1, %v2391_v36 }
 0x133   :  { %vm1823_vm2 = vcmp.gt.s32.totalorder %v1822_v32, 0 }
 0x134   :  { %v1824_v43 = vsel %vm1823_vm2, %v1822_v32, 0  ;;  %vm1927_vm3 = vcmp.gt.s32.totalorder %v1926_v49, 0  ;;  %vm1918_vm2 = vcmp.lt.s32.totalorder %v3361_v17, 0 }
 0x135   :  { %v1825_v4 = vshrl.u32 %v1824_v43, 5  ;;  %v1826_v45 = vand.u32 31, %v1824_v43  ;;  %v1928_v6 = vsel %vm1927_vm3, %v1926_v49, 0  ;;  %vm3447_vm3 = vcmp.le.f32.partialorder %v1812_v18, 0.7853982 }
 0x136   :  { %v3377_v23 = vshrl.u32 %v1928_v6, 5  ;;  %v1930_v30 = vand.u32 31, %v1928_v6 }
 0x137   :  { %v1827_v7 = vsub.s32 32, %v1826_v45  ;;  %v1829_v1 = vshll.u32 %v2901_v44, %v1826_v45  ;;  %v1832_v31 = vshll.u32 %v2902_v29, %v1826_v45  ;;  %v1835_v50 = vshll.u32 %v2903_v48, %v1826_v45 }
 0x138   :  { %v1838_v13 = vshll.u32 %v2904_v63, %v1826_v45  ;;  %v1841_v25 = vshll.u32 %v2905_v41, %v1826_v45  ;;  %vm1844_vm4 = vcmp.lt.s32.totalorder %v1825_v4, 1  ;;  %vm1845_vm5 = vcmp.lt.s32.totalorder %v1825_v4, 2 }
 0x139   :  { %v1830_v61 = vshrl.u32 %v2902_v29, %v1827_v7  ;;  %v1833_v15 = vshrl.u32 %v2903_v48, %v1827_v7  ;;  %v1836_v20 = vshrl.u32 %v2904_v63, %v1827_v7  ;;  %v1828_v52 = vshrl.u32 %v2901_v44, %v1827_v7 }
 0x13a   :  { %v1839_v24 = vshrl.u32 %v2905_v41, %v1827_v7  ;;  %v1842_v35 = vshrl.u32 %v2906_v11, %v1827_v7  ;;  %v1931_v53 = vsub.s32 32, %v1930_v30  ;;  %vm1846_vm6 = vcmp.lt.s32.totalorder %v1825_v4, 3 }
 0x13b   :  { %v1831_v51 = vor.u32 %v1830_v61, %v1829_v1  ;;  %v1834_v42 = vor.u32 %v1833_v15, %v1832_v31  ;;  %v1837_v14 = vor.u32 %v1836_v20, %v1835_v50  ;;  %vm1847_vm7 = vcmp.lt.s32.totalorder %v1825_v4, 4 }
 0x13c   :  { %v1840_v56 = vor.u32 %v1839_v24, %v1838_v13  ;;  %v1843_v39 = vor.u32 %v1842_v35, %v1841_v25  ;;  %v1933_v55 = vshll.u32 %v2901_v44, %v1930_v30  ;;  %v1934_v62 = vshrl.u32 %v2902_v29, %v1931_v53 }
 0x13d   :  { %v1848_v46 = vsel %vm1844_vm4, %v1828_v52, %v1831_v51  ;;  %v1849_v59 = vsel %vm1847_vm7, %v1837_v14, 2102212464  ;;  %v1852_v2 = vsel %vm1844_vm4, %v1831_v51, %v1834_v42  ;;  %v1856_v5 = vsel %vm1844_vm4, %v1834_v42, %v1837_v14 }
 0x13e   :  { %v1850_v37 = vsel %vm1846_vm6, %v1834_v42, %v1849_v59  ;;  %v1853_v22 = vsel %vm1847_vm7, %v1840_v56, 920167782  ;;  %v1857_v40 = vsel %vm1847_vm7, %v1843_v39, 1326507024  ;;  %v1936_v10 = vshll.u32 %v2902_v29, %v1930_v30 }
 0x13f   :  { %v1854_v58 = vsel %vm1846_vm6, %v1837_v14, %v1853_v22  ;;  %v1858_v54 = vsel %vm1846_vm6, %v1840_v56, %v1857_v40  ;;  %v1851_v16 = vsel %vm1845_vm5, %v1848_v46, %v1850_v37  ;;  %v1937_v33 = vshrl.u32 %v2903_v48, %v1931_v53 }
 0x140   :  { %v1855_v26 = vsel %vm1845_vm5, %v1852_v2, %v1854_v58  ;;  %v1859_v19 = vsel %vm1845_vm5, %v1856_v5, %v1858_v54  ;;  %v1935_v34 = vor.u32 %v1934_v62, %v1933_v55  ;;  %v1939_v43 = vshll.u32 %v2903_v48, %v1930_v30 }
 0x141   :  { %v3400_v57 = vmul.u32.u64.low %v3373_v9, %v1859_v19  ;;  %v3401_v36 = vmul.u32.u64.high %v3373_v9, %v1859_v19, %v3400_v57  ;;  %v3404_v32 = vmul.u32.u64.low %v3373_v9, %v1855_v26  ;;  %v3405_v38 = vmul.u32.u64.high %v3373_v9, %v1855_v26, %v3404_v32 }
 0x142   :  { %v1938_v49 = vor.u32 %v1937_v33, %v1936_v10  ;;  %v1940_v45 = vshrl.u32 %v2904_v63, %v1931_v53  ;;  %v1942_v6 = vshll.u32 %v2904_v63, %v1930_v30  ;;  %v1943_v4 = vshrl.u32 %v2905_v41, %v1931_v53 }
 0x143   :  { %v1946_v7 = vshrl.u32 %v2906_v11, %v1931_v53  ;;  %v1964_v1 = vshll.u32 %v1924_v27, 8  ;;  %v1867_v31 = vmul.u32 %v3373_v9, %v1851_v16  ;;  %v1932_v50 = vshrl.u32 %v2901_v44, %v1931_v53 }
 0x144   :  { %v1941_v13 = vor.u32 %v1940_v45, %v1939_v43  ;;  %v1945_v25 = vshll.u32 %v2905_v41, %v1930_v30  ;;  %vm1869_vm8 = vc.u32 %v3401_v36, %v3404_v32  ;;  %v1870_v61 = vadd.s32 1, %v3405_v38 }
 0x145   :  { %v1944_v15 = vor.u32 %v1943_v4, %v1942_v6  ;;  %vm1948_vm9 = vcmp.lt.s32.totalorder %v3377_v23, 1  ;;  %vm1950_vm10 = vcmp.lt.s32.totalorder %v3377_v23, 3  ;;  %vm1951_vm11 = vcmp.lt.s32.totalorder %v3377_v23, 4 }
 0x146   :  { %v1947_v20 = vor.u32 %v1946_v7, %v1945_v25  ;;  %v1956_v27 = vsel %vm1948_vm9, %v1935_v34, %v1938_v49  ;;  %v1871_v9 = vsel %vm1869_vm8, %v1870_v61, %v3405_v38  ;;  %v1953_v52 = vsel %vm1951_vm11, %v1941_v13, 2102212464 }
 0x147   :  { %v1957_v24 = vsel %vm1951_vm11, %v1944_v15, 920167782  ;;  %v1960_v35 = vsel %vm1948_vm9, %v1938_v49, %v1941_v13  ;;  %v1872_v51 = vadd.s32 %v1871_v9, %v1867_v31  ;;  %vm1949_vm12 = vcmp.lt.s32.totalorder %v3377_v23, 2 }
 0x148   :  { %v1958_v30 = vsel %vm1950_vm10, %v1941_v13, %v1957_v24  ;;  %v1961_v42 = vsel %vm1951_vm11, %v1947_v20, 1326507024  ;;  %v1952_v14 = vsel %vm1948_vm9, %v1932_v50, %v1935_v34  ;;  %v1954_v53 = vsel %vm1950_vm10, %v1938_v49, %v1953_v52  ;;  %v2332_v52 = vld [vmem:[%s3739_s3] sm:$0x1f]  ;;  %s2908_s3 = smov [#allocation7]  }
 0x149   :  { %v1959_v56 = vsel %vm1949_vm12, %v1956_v27, %v1958_v30  ;;  %v1962_v39 = vsel %vm1950_vm10, %v1944_v15, %v1961_v42  ;;  %v1873_v46 = vadd.s32 536870912, %v1872_v51  ;;  %v1955_v55 = vsel %vm1949_vm12, %v1952_v14, %v1954_v53  ;;  %s2377_s16 = sshll.u32 %s2908_s3, 4  ;;  %s2378_s16 = int_to_ptr.vmem [resolvable:$true] %s2377_s16 }
 0x14a   :  { %v1963_v59 = vsel %vm1949_vm12, %v1960_v35, %v1962_v39  ;;  %v3422_v2 = vmul.u32.u64.low %v1964_v1, %v1959_v56  ;;  %v3423_v5 = vmul.u32.u64.high %v1964_v1, %v1959_v56, %v3422_v2  ;;  %v1971_v23 = vmul.u32 %v1964_v1, %v1955_v55  ;;  %s2866_s17 = scalar_lea.vmem %s2378_s16, 640  ;;  %p2871_p3 = scmp.lt.s32.totalorder %s2378_s16, %s2378_s16 }
 0x14b   :  { %v3425_v37 = vmul.u32.u64.low %v1964_v1, %v1963_v59  ;;  %v3426_v22 = vmul.u32.u64.high %v1964_v1, %v1963_v59, %v3425_v37  ;;  %v1874_v40 = vshrl.u32 %v1873_v46, 30  ;;  %v1868_v4 = vadd.s32 %v3404_v32, %v3401_v36  ;;  %p2867_p2 = scmp.ne.s32.totalorder %s2378_s16, %s2866_s17  ;;  %p2872_p4 = scmp.lt.s32.totalorder %s2866_s17, %s2866_s17 }
 0x14c   :  { %v1974_v54 = vadd.s32 1, %v3423_v5  ;;  %v1800_v24 = vsub.s32 4, %v3338_v12  ;;  %vm2333_vm0 = vcmp.ne.s32.totalorder %v2332_v52, 0  ;;  %v1792_v39 = vsub.s32 2, %v3338_v12 }
 0x14d   :  { %v1875_v58 = vshll.u32 %v1874_v40, 30  ;;  %vm1973_vm13 = vc.u32 %v3426_v22, %v3422_v2  ;;  %v1898_v32 = vsub.s32 4, %v1874_v40  ;;  %v1972_v30 = vadd.s32 %v3422_v2, %v3426_v22  ;;  %p2873_p5 = por %p2872_p4, %p2871_p3 }
 0x14e   :  { %v1975_v10 = vsel %vm1973_vm13, %v1974_v54, %v3423_v5  ;;  %v1801_v37 = vrot.slane %v3344_v0, %v1800_v24  ;;  %vm3464_vm4 = vcmp.le.f32.partialorder %v1916_v28, 0.7853982  ;;  %vm1904_vm6 = vweird.f32 %v3358_v8 }
 0x14f   :  { %v1876_v62 = vsub.s32 %v1872_v51, %v1875_v58  ;;  %v1976_v16 = vadd.s32 %v1975_v10, %v1971_v23  ;;  %v1899_v2 = vsel %vm1814_vm1, %v1898_v32, %v1874_v40  ;;  %v2907_v10 = vmov 0   ;;  %p2874_p6 = pnand %p2873_p5, %p2867_p2 }
 0x150   :  { %v1793_v40 = vrot.slane %v3344_v0, %v1792_v39 }
 0x151   :  { %v1878_v26 = vsub.s32 0, %v1876_v62  ;;  %v1977_v19 = vadd.s32 536870912, %v1976_v16 }
 0x153   :  { %v2388_v33 = vmin.u32 %v1878_v26, %v1876_v62  ;;  %v1978_v57 = vshrl.u32 %v1977_v19, 30 }
 0x155   :  { %v1880_v38 = vclz %v2388_v33  ;;  %v1979_v34 = vshll.u32 %v1978_v57, 30  ;;  %v2002_v53 = vsub.s32 4, %v1978_v57 }
 0x157   :  { %v2389_v49 = vadd.s32 4294967294, %v1880_v38  ;;  %v1980_v43 = vsub.s32 %v1976_v16, %v1979_v34  ;;  %v2003_v54 = vsel %vm1918_vm2, %v2002_v53, %v1978_v57  ;;  %v3452_v16 = vsel %vm2333_vm0, 1, %v2907_v10 }
 0x158   :  { %v1901_v34 = vsel %vm3447_vm3, 0, %v1899_v2  ;;  %vm2008_vm0 = vweird.f32 %v3361_v17 }
 0x159   :  { %vm2390_vm14 = vcmp.lt.s32.totalorder %v2389_v49, 0  ;;  %v1982_v6 = vsub.s32 0, %v1980_v43 }
 0x15a   :  { %v1883_v45 = vsel %vm2390_vm14, 0, %v2389_v49  ;;  %v2005_v49 = vsel %vm3464_vm4, 0, %v2003_v54 }
 0x15b   :  { %v1884_v7 = vsub.s32 32, %v1883_v45  ;;  %v1888_v1 = vsub.s32 4294967266, %v1883_v45  ;;  %v2392_v31 = vmin.u32 %v1982_v6, %v1980_v43  ;;  %v1885_v50 = vshll.u32 %v1876_v62, %v1883_v45 }
 0x15d   :  { %v1886_v13 = vshrl.u32 %v1868_v4, %v1884_v7  ;;  %v1889_v25 = vadd.s32 127, %v1888_v1  ;;  %v1984_v61 = vclz %v2392_v31  ;;  %v3480_v4 = vrot.slane %v3452_v16, %v1784_v21 }
 0x15e   :  { %v1905_v31 = vadd.s32 3, %v1901_v34 }
 0x15f   :  { %v1887_v15 = vor.u32 %v1886_v13, %v1885_v50  ;;  %v1890_v20 = vshll.u32 %v1889_v25, 23  ;;  %v2393_v27 = vadd.s32 4294967294, %v1984_v61  ;;  %v2009_v61 = vadd.s32 3, %v2005_v49 }
 0x160   :  { %vm2355_vm5 = vcmp.eq.s32.totalorder %v3480_v4, 1 }
 0x161   :  { %v1891_v9 = vor.u32 4788187, %v1890_v20  ;;  %vm2394_vm15 = vcmp.lt.s32.totalorder %v2393_v27, 0  ;;  %v1894_v36 = vcvt.s32.f32 %v1887_v15 }
 0x162   :  { %v1987_v51 = vsel %vm2394_vm15, 0, %v2393_v27 }
 0x163   :  { %v1892_v35 = vand.u32 2147483647, %v1891_v9  ;;  %v1988_v42 = vsub.s32 32, %v1987_v51  ;;  %v1992_v14 = vsub.s32 4294967266, %v1987_v51  ;;  %v1989_v46 = vshll.u32 %v1980_v43, %v1987_v51 }
 0x164   :  { %v1796_v43 = vsub.s32 3, %v3338_v12 }
 0x165   :  { %v1895_v56 = vmul.f32 %v1894_v36, %v1892_v35  ;;  %v1990_v59 = vshrl.u32 %v1972_v30, %v1988_v42  ;;  %v1993_v5 = vadd.s32 127, %v1992_v14  ;;  %v1906_v36 = vand.u32 3, %v1905_v31 }
 0x166   :  { %v1797_v20 = vrot.slane %v3344_v0, %v1796_v43  ;;  %v3505_v42 = vand.u32 3, %v2009_v61  ;;  %v3510_v14 = vrot.slane %v3452_v16, %v1788_v47 }
 0x167   :  { %v1896_v55 = vxor.u32 2147483648, %v1895_v56  ;;  %v1991_v22 = vor.u32 %v1990_v59, %v1989_v46  ;;  %v1994_v58 = vshll.u32 %v1993_v5, 23  ;;  %vm1907_vm8 = vcmp.lt.s32.totalorder %v1906_v36, 2 }
 0x168   :  { %vm1908_vm9 = vcmp.eq.s32.totalorder %v1906_v36, 0  ;;  %vm1911_vm10 = vcmp.eq.s32.totalorder %v1906_v36, 2  ;;  %vm2015_vm11 = vcmp.eq.s32.totalorder %v3505_v42, 2  ;;  %vm2012_vm13 = vcmp.eq.s32.totalorder %v3505_v42, 0 }
 0x169   :  { %v1897_v62 = vsel %vm1814_vm1, %v1896_v55, %v1895_v56  ;;  %v1995_v33 = vor.u32 4788187, %v1994_v58  ;;  %v1998_v28 = vcvt.s32.f32 %v1991_v22  ;;  %vm2011_vm14 = vcmp.lt.s32.totalorder %v3505_v42, 2 }
 0x16a   :  { %v3457_v26 = vpop.f32.mrb[2].mxu0  ;;  %v1900_v19 = vsel %vm3447_vm3, %v3358_v8, %v1897_v62  ;;  %vm2356_vm15 = vcmp.eq.s32.totalorder %v3510_v14, 1 }
 0x16b   :  { %v3469_v57 = vadd.f32 %v1801_v37, %v3457_v26  ;;  %v2538_v38 = vpop.f32.mrb[3].mxu0  ;;  %2802 = vcosq.f32 %v1900_v19  ;;  %v1996_v45 = vand.u32 2147483647, %v1995_v33 }
 0x16c   :  { %2804 = vsinq.f32 %v1900_v19 }
 0x16d   :  { %v2228_v6 = vand.u32 2147483647, %v3469_v57  ;;  %v2231_v1 = vand.u32 2139095040, %v3469_v57  ;;  %v1999_v50 = vmul.f32 %v1998_v28, %v1996_v45 }
 0x16e   :  { %v3482_v7 = vpop.f32.mrb[2].mxu1 }
 0x16f   :  { %v3486_v13 = vadd.f32 %v1793_v40, %v3482_v7  ;;  %v3488_v25 = vpop.f32.mrb[3].mxu1  ;;  %v2232_v15 = vshrl.u32 %v2231_v1, 23  ;;  %v2000_v27 = vxor.u32 2147483648, %v1999_v50  ;;  %v2235_v52 = vand.u32 8388607, %v2228_v6 }
 0x170   :  { %v3513_v59 = vadd.f32 %v1797_v20, %v3488_v25 }
 0x171   :  { %v2020_v21 = vand.u32 2147483647, %v3486_v13  ;;  %v2023_v9 = vand.u32 2139095040, %v3486_v13  ;;  %v2403_v35 = vadd.s32 4294967169, %v2232_v15  ;;  %v2001_v32 = vsel %vm1918_vm2, %v2000_v27, %v1999_v50 }
 0x172   :  { %v2004_v0 = vsel %vm3464_vm4, %v3361_v17, %v2001_v32  ;;  %v2236_v46 = vor.u32 8388608, %v2235_v52  ;;  %v2127_v10 = vand.u32 2139095040, %v3513_v59 }
 0x173   :  { %v2024_v51 = vshrl.u32 %v2023_v9, 23  ;;  %v2027_v30 = vand.u32 8388607, %v2020_v21  ;;  %v2238_v53 = vadd.s32 1, %v2403_v35  ;;  %2806 = vcosq.f32 %v2004_v0 }
 0x174   :  { %2808 = vsinq.f32 %v2004_v0  ;;  %v3519_v62 = vshll.u32 %v2236_v46, 8 }
 0x175   :  { %v2395_v56 = vadd.s32 4294967169, %v2024_v51  ;;  %v2803_v5 = vpop.eup %2802  ;;  %v2028_v37 = vor.u32 8388608, %v2027_v30  ;;  %vm2239_vm7 = vcmp.gt.s32.totalorder %v2238_v53, 0 }
 0x176   :  { %v2805_v55 = vpop.eup %2804  ;;  %v1912_v2 = vxor.u32 2147483648, %v2803_v5  ;;  %v2240_v58 = vsel %vm2239_vm7, %v2238_v53, 0 }
 0x177   :  { %v2030_v22 = vadd.s32 1, %v2395_v56  ;;  %v1909_v47 = vxor.u32 2147483648, %v2805_v55  ;;  %v3516_v54 = vand.u32 31, %v2240_v58  ;;  %v3523_v18 = vshll.u32 %v2028_v37, 8 }
 0x178   :  { %v1913_v23 = vsel %vm1911_vm10, %v1912_v2, %v2805_v55  ;;  %v3531_v45 = vshrl.u32 %v2240_v58, 5 }
 0x179   :  { %vm2031_vm12 = vcmp.gt.s32.totalorder %v2030_v22, 0  ;;  %v1910_v40 = vsel %vm1908_vm9, %v2803_v5, %v1909_v47  ;;  %v3526_v33 = vsub.s32 32, %v3516_v54  ;;  %v2245_v1 = vshll.u32 %v2901_v44, %v3516_v54 }
 0x17a   :  { %v2032_v19 = vsel %vm2031_vm12, %v2030_v22, 0  ;;  %v1914_v38 = vsel %vm1907_vm8, %v1910_v40, %v1913_v23  ;;  %v2248_v42 = vshll.u32 %v2902_v29, %v3516_v54  ;;  %vm2263_vm7 = vcmp.lt.s32.totalorder %v3531_v45, 4 }
 0x17b   :  { %v2033_v34 = vshrl.u32 %v2032_v19, 5  ;;  %v2034_v49 = vand.u32 31, %v2032_v19  ;;  %v1915_v28 = vsel %vm1904_vm6, nan, %v1914_v38  ;;  %v2246_v31 = vshrl.u32 %v2902_v29, %v3526_v33 }
 0x17c   :  { %v2249_v50 = vshrl.u32 %v2903_v48, %v3526_v33  ;;  %v2360_v61 = vsel %vm2355_vm5, %v3353_v60, %v1915_v28  ;;  %vm2260_vm6 = vcmp.lt.s32.totalorder %v3531_v45, 1  ;;  %vm2261_vm8 = vcmp.lt.s32.totalorder %v3531_v45, 2 }
 0x17d   :  { %v2035_v15 = vsub.s32 32, %v2034_v49  ;;  %v2037_v20 = vshll.u32 %v2901_v44, %v2034_v49  ;;  %v2040_v8 = vshll.u32 %v2902_v29, %v2034_v49  ;;  %2365 = vst [vmem:[#allocation7] sm:$0xff] %v2360_v61  ;;  %v2043_v27 = vshll.u32 %v2903_v48, %v2034_v49  ;;  %v2807_v35 = vpop.eup %2806 }
 0x17e   :  { %v2046_v9 = vshll.u32 %v2904_v63, %v2034_v49  ;;  %v2049_v52 = vshll.u32 %v2905_v41, %v2034_v49  ;;  %vm2052_vm1 = vcmp.lt.s32.totalorder %v2033_v34, 1  ;;  %v2809_v51 = vpop.eup %2808  ;;  %v2016_v30 = vxor.u32 2147483648, %v2807_v35 }
 0x17f   :  { %v2036_v36 = vshrl.u32 %v2901_v44, %v2035_v15  ;;  %v2038_v32 = vshrl.u32 %v2902_v29, %v2035_v15  ;;  %v2041_v60 = vshrl.u32 %v2903_v48, %v2035_v15  ;;  %v2044_v4 = vshrl.u32 %v2904_v63, %v2035_v15 }
 0x180   :  { %v2047_v0 = vshrl.u32 %v2905_v41, %v2035_v15  ;;  %v2050_v53 = vshrl.u32 %v2906_v11, %v2035_v15  ;;  %vm2053_vm2 = vcmp.lt.s32.totalorder %v2033_v34, 2  ;;  %v2013_v56 = vxor.u32 2147483648, %v2809_v51 }
 0x181   :  { %v2039_v46 = vor.u32 %v2038_v32, %v2037_v20  ;;  %v2042_v5 = vor.u32 %v2041_v60, %v2040_v8  ;;  %v2045_v37 = vor.u32 %v2044_v4, %v2043_v27  ;;  %v2017_v55 = vsel %vm2015_vm11, %v2016_v30, %v2809_v51 }
 0x182   :  { %v2048_v2 = vor.u32 %v2047_v0, %v2046_v9  ;;  %v2051_v22 = vor.u32 %v2050_v53, %v2049_v52  ;;  %vm2054_vm3 = vcmp.lt.s32.totalorder %v2033_v34, 3  ;;  %v2014_v58 = vsel %vm2012_vm13, %v2807_v35, %v2013_v56 }
 0x183   :  { %vm2055_vm4 = vcmp.lt.s32.totalorder %v2033_v34, 4  ;;  %v2056_v47 = vsel %vm2052_vm1, %v2036_v36, %v2039_v46  ;;  %v2060_v23 = vsel %vm2052_vm1, %v2039_v46, %v2042_v5  ;;  %v2018_v40 = vsel %vm2011_vm14, %v2014_v58, %v2017_v55 }
 0x184   :  { %v2057_v19 = vsel %vm2055_vm4, %v2045_v37, 2102212464  ;;  %v2061_v38 = vsel %vm2055_vm4, %v2048_v2, 920167782  ;;  %v2064_v49 = vsel %vm2052_vm1, %v2042_v5, %v2045_v37  ;;  %v2019_v28 = vsel %vm2008_vm0, nan, %v2018_v40 }
 0x185   :  { %v2058_v61 = vsel %vm2054_vm3, %v2042_v5, %v2057_v19  ;;  %v2062_v15 = vsel %vm2054_vm3, %v2045_v37, %v2061_v38  ;;  %v2065_v20 = vsel %vm2055_vm4, %v2051_v22, 1326507024  ;;  %v2361_v8 = vsel %vm2356_vm15, %v3355_v3, %v2019_v28 }
 0x186   :  { %v2063_v27 = vsel %vm2053_vm2, %v2060_v23, %v2062_v15  ;;  %v2066_v9 = vsel %vm2054_vm3, %v2048_v2, %v2065_v20  ;;  %2366 = vst [vmem:[#allocation7 + $0x8] sm:$0xff] %v2361_v8  ;;  %v2059_v52 = vsel %vm2053_vm2, %v2056_v47, %v2058_v61  ;;  %v2247_v3 = vor.u32 %v2246_v31, %v2245_v1 }
 0x187   :  { %v2067_v35 = vsel %vm2053_vm2, %v2064_v49, %v2066_v9  ;;  %v3576_v17 = vmul.u32.u64.low %v3523_v18, %v2063_v27  ;;  %v3577_v36 = vmul.u32.u64.high %v3523_v18, %v2063_v27, %v3576_v17  ;;  %v2250_v14 = vor.u32 %v2249_v50, %v2248_v42 }
 0x188   :  { %v3580_v32 = vmul.u32.u64.low %v3523_v18, %v2067_v35  ;;  %v3581_v60 = vmul.u32.u64.high %v3523_v18, %v2067_v35, %v3580_v32  ;;  %v2251_v4 = vshll.u32 %v2903_v48, %v3516_v54  ;;  %v2252_v51 = vshrl.u32 %v2904_v63, %v3526_v33 }
 0x189   :  { %v2254_v34 = vshll.u32 %v2904_v63, %v3516_v54  ;;  %v2255_v30 = vshrl.u32 %v2905_v41, %v3526_v33  ;;  %v2244_v0 = vshrl.u32 %v2901_v44, %v3526_v33  ;;  %v2257_v53 = vshll.u32 %v2905_v41, %v3516_v54 }
 0x18a   :  { %v2258_v1 = vshrl.u32 %v2906_v11, %v3526_v33  ;;  %v2128_v31 = vshrl.u32 %v2127_v10, 23  ;;  %v2075_v50 = vmul.u32 %v3523_v18, %v2059_v52  ;;  %v2078_v56 = vadd.s32 1, %v3577_v36 }
 0x18b   :  { %v2253_v46 = vor.u32 %v2252_v51, %v2251_v4  ;;  %v2256_v5 = vor.u32 %v2255_v30, %v2254_v34  ;;  %vm2077_vm5 = vc.u32 %v3581_v60, %v3576_v17  ;;  %v2268_v55 = vsel %vm2260_vm6, %v2247_v3, %v2250_v14 }
 0x18c   :  { %v2259_v37 = vor.u32 %v2258_v1, %v2257_v53  ;;  %v2079_v54 = vsel %vm2077_vm5, %v2078_v56, %v3577_v36  ;;  %vm2262_vm9 = vcmp.lt.s32.totalorder %v3531_v45, 3  ;;  %v2264_v22 = vsel %vm2260_vm6, %v2244_v0, %v2247_v3 }
 0x18d   :  { %v2265_v33 = vsel %vm2263_vm7, %v2253_v46, 2102212464  ;;  %v2080_v10 = vadd.s32 %v2079_v54, %v2075_v50  ;;  %v2269_v18 = vsel %vm2263_vm7, %v2256_v5, 920167782  ;;  %v2272_v2 = vsel %vm2260_vm6, %v2250_v14, %v2253_v46 }
 0x18e   :  { %v2270_v58 = vsel %vm2262_vm9, %v2253_v46, %v2269_v18  ;;  %v2273_v47 = vsel %vm2263_vm7, %v2259_v37, 1326507024  ;;  %v2399_v23 = vadd.s32 4294967169, %v2128_v31  ;;  %v2266_v19 = vsel %vm2262_vm9, %v2250_v14, %v2265_v33 }
 0x18f   :  { %v2081_v40 = vadd.s32 536870912, %v2080_v10  ;;  %v2271_v38 = vsel %vm2261_vm8, %v2268_v55, %v2270_v58  ;;  %v2274_v49 = vsel %vm2262_vm9, %v2256_v5, %v2273_v47  ;;  %v2267_v42 = vsel %vm2261_vm8, %v2264_v22, %v2266_v19 }
 0x190   :  { %v2275_v28 = vsel %vm2261_vm8, %v2272_v2, %v2274_v49  ;;  %v3612_v61 = vmul.u32.u64.low %v3519_v62, %v2271_v38  ;;  %v3613_v15 = vmul.u32.u64.high %v3519_v62, %v2271_v38, %v3612_v61  ;;  %v2134_v20 = vadd.s32 1, %v2399_v23 }
 0x191   :  { %v3616_v8 = vshrl.u32 %v2081_v40, 30  ;;  %v3619_v27 = vmul.u32.u64.low %v3519_v62, %v2275_v28  ;;  %v3620_v9 = vmul.u32.u64.high %v3519_v62, %v2275_v28, %v3619_v27  ;;  %v2124_v52 = vand.u32 2147483647, %v3513_v59 }
 0x192   :  { %vm2135_vm10 = vcmp.gt.s32.totalorder %v2134_v20, 0  ;;  %v2286_v32 = vadd.s32 1, %v3613_v15  ;;  %v2283_v4 = vmul.u32 %v3519_v62, %v2267_v42  ;;  %v2076_v31 = vadd.s32 %v3576_v17, %v3581_v60 }
 0x193   :  { %v2083_v35 = vshll.u32 %v3616_v8, 30  ;;  %v2136_v36 = vsel %vm2135_vm10, %v2134_v20, 0  ;;  %vm2285_vm11 = vc.u32 %v3620_v9, %v3612_v61  ;;  %v2131_v45 = vand.u32 8388607, %v2124_v52 }
 0x194   :  { %v2138_v3 = vand.u32 31, %v2136_v36  ;;  %v2287_v51 = vsel %vm2285_vm11, %v2286_v32, %v3613_v15  ;;  %v2137_v54 = vshrl.u32 %v2136_v36, 5  ;;  %vm2022_vm2 = vcmp.lt.s32.totalorder %v3486_v13, 0 }
 0x195   :  { %v2084_v14 = vsub.s32 %v2080_v10, %v2083_v35  ;;  %v2288_v30 = vadd.s32 %v2287_v51, %v2283_v4  ;;  %v2132_v50 = vor.u32 8388608, %v2131_v45  ;;  %vm3673_vm4 = vcmp.le.f32.partialorder %v2020_v21, 0.7853982 }
 0x196   :  { %v2139_v0 = vsub.s32 32, %v2138_v3  ;;  %v2141_v33 = vshll.u32 %v2901_v44, %v2138_v3  ;;  %v2144_v18 = vshll.u32 %v2902_v29, %v2138_v3  ;;  %v2150_v17 = vshll.u32 %v2904_v63, %v2138_v3 }
 0x197   :  { %v2086_v34 = vsub.s32 0, %v2084_v14  ;;  %v2289_v1 = vadd.s32 536870912, %v2288_v30  ;;  %v2147_v58 = vshll.u32 %v2903_v48, %v2138_v3  ;;  %v2153_v47 = vshll.u32 %v2905_v41, %v2138_v3 }
 0x198   :  { %v2142_v46 = vshrl.u32 %v2902_v29, %v2139_v0  ;;  %v2145_v62 = vshrl.u32 %v2903_v48, %v2139_v0  ;;  %v2151_v5 = vshrl.u32 %v2905_v41, %v2139_v0  ;;  %v2148_v55 = vshrl.u32 %v2904_v63, %v2139_v0 }
 0x199   :  { %v2396_v53 = vmin.u32 %v2086_v34, %v2084_v14  ;;  %v3637_v37 = vshrl.u32 %v2289_v1, 30  ;;  %v2154_v60 = vshrl.u32 %v2906_v11, %v2139_v0  ;;  %v2140_v22 = vshrl.u32 %v2901_v44, %v2139_v0 }
 0x19a   :  { %v2143_v23 = vor.u32 %v2142_v46, %v2141_v33  ;;  %v2146_v40 = vor.u32 %v2145_v62, %v2144_v18  ;;  %v2152_v19 = vor.u32 %v2151_v5, %v2150_v17  ;;  %v2149_v28 = vor.u32 %v2148_v55, %v2147_v58 }
 0x19b   :  { %v2088_v56 = vclz %v2396_v53  ;;  %v2291_v2 = vshll.u32 %v3637_v37, 30  ;;  %v2155_v29 = vor.u32 %v2154_v60, %v2153_v47  ;;  %vm2156_vm13 = vcmp.lt.s32.totalorder %v2137_v54, 1 }
 0x19c   :  { %vm2157_vm14 = vcmp.lt.s32.totalorder %v2137_v54, 2  ;;  %vm2158_vm15 = vcmp.lt.s32.totalorder %v2137_v54, 3  ;;  %vm2159_vm0 = vcmp.lt.s32.totalorder %v2137_v54, 4  ;;  %v2164_v41 = vsel %vm2156_vm13, %v2143_v23, %v2146_v40 }
 0x19d   :  { %v2397_v10 = vadd.s32 4294967294, %v2088_v56  ;;  %v2292_v49 = vsub.s32 %v2288_v30, %v2291_v2  ;;  %v2165_v27 = vsel %vm2159_vm0, %v2152_v19, 920167782  ;;  %v2168_v36 = vsel %vm2156_vm13, %v2146_v40, %v2149_v28 }
 0x19e   :  { %v2166_v35 = vsel %vm2158_vm15, %v2149_v28, %v2165_v27  ;;  %v2169_v32 = vsel %vm2159_vm0, %v2155_v29, 1326507024  ;;  %v2161_v51 = vsel %vm2159_vm0, %v2149_v28, 2102212464  ;;  %v2172_v30 = vshll.u32 %v2132_v50, 8 }
 0x19f   :  { %vm2398_vm12 = vcmp.lt.s32.totalorder %v2397_v10, 0  ;;  %v2294_v20 = vsub.s32 0, %v2292_v49  ;;  %v2170_v45 = vsel %vm2158_vm15, %v2152_v19, %v2169_v32  ;;  %v2167_v34 = vsel %vm2157_vm14, %v2164_v41, %v2166_v35 }
 0x1a0   :  { %v2091_v38 = vsel %vm2398_vm12, 0, %v2397_v10  ;;  %v2160_v53 = vsel %vm2156_vm13, %v2140_v22, %v2143_v23  ;;  %v2171_v1 = vsel %vm2157_vm14, %v2168_v36, %v2170_v45  ;;  %v2162_v56 = vsel %vm2158_vm15, %v2146_v40, %v2161_v51 }
 0x1a1   :  { %v2092_v15 = vsub.s32 32, %v2091_v38  ;;  %v2096_v63 = vsub.s32 4294967266, %v2091_v38  ;;  %v2093_v11 = vshll.u32 %v2084_v14, %v2091_v38  ;;  %v2404_v42 = vmin.u32 %v2294_v20, %v2292_v49 }
 0x1a2   :  { %v3656_v46 = vmul.u32.u64.low %v2172_v30, %v2171_v1  ;;  %v3657_v62 = vmul.u32.u64.high %v2172_v30, %v2171_v1, %v3656_v46  ;;  %v3659_v55 = vmul.u32.u64.low %v2172_v30, %v2167_v34  ;;  %v3660_v10 = vmul.u32.u64.high %v2172_v30, %v2167_v34, %v3659_v55 }
 0x1a3   :  { %v2094_v44 = vshrl.u32 %v2076_v31, %v2092_v15  ;;  %v2097_v48 = vadd.s32 127, %v2096_v63  ;;  %v2296_v14 = vclz %v2404_v42  ;;  %v2106_v50 = vsub.s32 4, %v3616_v8 }
 0x1a4   :  { %v2163_v60 = vsel %vm2157_vm14, %v2160_v53, %v2162_v56  ;;  %v2284_v2 = vadd.s32 %v3612_v61, %v3620_v9  ;;  %vm2181_vm3 = vc.u32 %v3657_v62, %v3659_v55  ;;  %v2182_v23 = vadd.s32 1, %v3660_v10 }
 0x1a5   :  { %v2095_v3 = vor.u32 %v2094_v44, %v2093_v11  ;;  %v2098_v4 = vshll.u32 %v2097_v48, 23  ;;  %v2405_v31 = vadd.s32 4294967294, %v2296_v14  ;;  %v2179_v28 = vmul.u32 %v2172_v30, %v2163_v60 }
 0x1a6   :  { %v2107_v9 = vsel %vm2022_vm2, %v2106_v50, %v3616_v8  ;;  %v2183_v29 = vsel %vm2181_vm3, %v2182_v23, %v3660_v10  ;;  %v2314_v35 = vsub.s32 4, %v3637_v37  ;;  %vm2230_vm5 = vcmp.lt.s32.totalorder %v3469_v57, 0 }
 0x1a7   :  { %v2099_v0 = vor.u32 4788187, %v2098_v4  ;;  %v2102_v33 = vcvt.s32.f32 %v2095_v3  ;;  %vm2406_vm1 = vcmp.lt.s32.totalorder %v2405_v31, 0  ;;  %v2184_v11 = vadd.s32 %v2183_v29, %v2179_v28 }
 0x1a8   :  { %v2299_v17 = vsel %vm2406_vm1, 0, %v2405_v31  ;;  %v2109_v20 = vsel %vm3673_vm4, 0, %v2107_v9  ;;  %vm3691_vm6 = vcmp.le.f32.partialorder %v2228_v6, 0.7853982  ;;  %v2315_v14 = vsel %vm2230_vm5, %v2314_v35, %v3637_v37 }
 0x1a9   :  { %v2100_v5 = vand.u32 2147483647, %v2099_v0  ;;  %v2300_v22 = vsub.s32 32, %v2299_v17  ;;  %v2304_v58 = vsub.s32 4294967266, %v2299_v17  ;;  %v2301_v40 = vshll.u32 %v2292_v49, %v2299_v17 }
 0x1aa   :  { %v2185_v44 = vadd.s32 536870912, %v2184_v11  ;;  %v2113_v8 = vadd.s32 3, %v2109_v20  ;;  %v2346_v0 = vrot.slane %v3452_v16, %v1792_v39  ;;  %v2317_v46 = vsel %vm3691_vm6, 0, %v2315_v14 }
 0x1ab   :  { %v2103_v18 = vmul.f32 %v2102_v33, %v2100_v5  ;;  %v2302_v19 = vshrl.u32 %v2284_v2, %v2300_v22  ;;  %v2305_v38 = vadd.s32 127, %v2304_v58  ;;  %vm2112_vm11 = vweird.f32 %v3486_v13 }
 0x1ac   :  { %v3684_v27 = vshrl.u32 %v2185_v44, 30  ;;  %v2114_v4 = vand.u32 3, %v2113_v8  ;;  %vm2357_vm10 = vcmp.eq.s32.totalorder %v2346_v0, 1  ;;  %v2321_v10 = vadd.s32 3, %v2317_v46 }
 0x1ad   :  { %v2104_v47 = vxor.u32 2147483648, %v2103_v18  ;;  %v2303_v63 = vor.u32 %v2302_v19, %v2301_v40  ;;  %v2306_v49 = vshll.u32 %v2305_v38, 23  ;;  %v2180_v22 = vadd.s32 %v3659_v55, %v3657_v62 }
 0x1ae   :  { %v2187_v36 = vshll.u32 %v3684_v27, 30  ;;  %vm2119_vm7 = vcmp.eq.s32.totalorder %v2114_v4, 2  ;;  %vm2116_vm8 = vcmp.eq.s32.totalorder %v2114_v4, 0  ;;  %vm2115_vm9 = vcmp.lt.s32.totalorder %v2114_v4, 2 }
 0x1af   :  { %v2105_v61 = vsel %vm2022_vm2, %v2104_v47, %v2103_v18  ;;  %v2307_v21 = vor.u32 4788187, %v2306_v49  ;;  %v2310_v41 = vcvt.s32.f32 %v2303_v63  ;;  %v2322_v2 = vand.u32 3, %v2321_v10 }
 0x1b0   :  { %v2108_v15 = vsel %vm3673_vm4, %v3486_v13, %v2105_v61  ;;  %v2188_v3 = vsub.s32 %v2184_v11, %v2187_v36  ;;  %v2354_v13 = vrot.slane %v3452_v16, %v1800_v24  ;;  %vm2320_vm1 = vweird.f32 %v3469_v57 }
 0x1b1   :  { %2810 = vcosq.f32 %v2108_v15  ;;  %v2308_v48 = vand.u32 2147483647, %v2307_v21  ;;  %vm2327_vm13 = vcmp.eq.s32.totalorder %v2322_v2, 2  ;;  %vm2324_vm14 = vcmp.eq.s32.totalorder %v2322_v2, 0 }
 0x1b2   :  { %2812 = vsinq.f32 %v2108_v15  ;;  %v2190_v34 = vsub.s32 0, %v2188_v3  ;;  %vm2323_vm15 = vcmp.lt.s32.totalorder %v2322_v2, 2  ;;  %vm2359_vm0 = vcmp.eq.s32.totalorder %v2354_v13, 1 }
 0x1b3   :  { %v2311_v42 = vmul.f32 %v2310_v41, %v2308_v48  ;;  %vm2369_vm2 = vcmask 916480   ;;  %v2210_v21 = vsub.s32 4, %v3684_v27  ;;  %vm2126_vm3 = vcmp.lt.s32.totalorder %v3513_v59, 0 }
 0x1b4   :  { %v2400_v6 = vmin.u32 %v2190_v34, %v2188_v3  ;;  %vm2125_vm4 = vcmp.le.f32.partialorder %v2124_v52, 0.7853982  ;;  %v2350_v36 = vrot.slane %v3452_v16, %v1796_v43 }
 0x1b5   :  { %v2312_v32 = vxor.u32 2147483648, %v2311_v42 }
 0x1b6   :  { %v2192_v5 = vclz %v2400_v6 }
 0x1b7   :  { %v2313_v45 = vsel %vm2230_vm5, %v2312_v32, %v2311_v42 }
 0x1b8   :  { %v2316_v53 = vsel %vm3691_vm6, %v3469_v57, %v2313_v45  ;;  %v2401_v18 = vadd.s32 4294967294, %v2192_v5  ;;  %v2211_v57 = vsel %vm2126_vm3, %v2210_v21, %v3684_v27 }
 0x1b9   :  { %2814 = vcosq.f32 %v2316_v53  ;;  %v2213_v8 = vsel %vm2125_vm4, 0, %v2211_v57 }
 0x1ba   :  { %2816 = vsinq.f32 %v2316_v53  ;;  %vm2402_vm12 = vcmp.lt.s32.totalorder %v2401_v18, 0  ;;  %v2217_v42 = vadd.s32 3, %v2213_v8 }
 0x1bb   :  { %v2811_v30 = vpop.eup %2810  ;;  %v2195_v60 = vsel %vm2402_vm12, 0, %v2401_v18 }
 0x1bc   :  { %v2813_v1 = vpop.eup %2812  ;;  %v2120_v31 = vxor.u32 2147483648, %v2811_v30  ;;  %v2196_v58 = vsub.s32 32, %v2195_v60  ;;  %v2200_v47 = vsub.s32 4294967266, %v2195_v60  ;;  %v2197_v40 = vshll.u32 %v2188_v3, %v2195_v60 }
 0x1bd   :  { %v2117_v56 = vxor.u32 2147483648, %v2813_v1 }
 0x1be   :  { %v2121_v37 = vsel %vm2119_vm7, %v2120_v31, %v2813_v1  ;;  %v2198_v19 = vshrl.u32 %v2180_v22, %v2196_v58  ;;  %v2201_v38 = vadd.s32 127, %v2200_v47 }
 0x1bf   :  { %v2118_v33 = vsel %vm2116_vm8, %v2811_v30, %v2117_v56  ;;  %vm2358_vm8 = vcmp.eq.s32.totalorder %v2350_v36, 1 }
 0x1c0   :  { %v2122_v39 = vsel %vm2115_vm9, %v2118_v33, %v2121_v37  ;;  %v2199_v61 = vor.u32 %v2198_v19, %v2197_v40  ;;  %v2202_v9 = vshll.u32 %v2201_v38, 23  ;;  %vm2216_vm9 = vweird.f32 %v3513_v59 }
 0x1c1   :  { %v2123_v50 = vsel %vm2112_vm11, nan, %v2122_v39 }
 0x1c2   :  { %v2362_v17 = vsel %vm2357_vm10, %v3482_v7, %v2123_v50  ;;  %v2203_v55 = vor.u32 4788187, %v2202_v9  ;;  %v2206_v49 = vcvt.s32.f32 %v2199_v61 }
 0x1c3   :  { %2367 = vst [vmem:[#allocation7 + $0x10] sm:$0xff] %v2362_v17  ;;  %v2815_v23 = vpop.eup %2814 }
 0x1c4   :  { %v2817_v28 = vpop.eup %2816  ;;  %v2328_v54 = vxor.u32 2147483648, %v2815_v23  ;;  %v2204_v63 = vand.u32 2147483647, %v2203_v55 }
 0x1c5   :  { %v2325_v7 = vxor.u32 2147483648, %v2817_v28 }
 0x1c6   :  { %v2329_v29 = vsel %vm2327_vm13, %v2328_v54, %v2817_v28  ;;  %v2207_v20 = vmul.f32 %v2206_v49, %v2204_v63 }
 0x1c7   :  { %v2326_v62 = vsel %vm2324_vm14, %v2815_v23, %v2325_v7 }
 0x1c8   :  { %v2330_v15 = vsel %vm2323_vm15, %v2326_v62, %v2329_v29  ;;  %v2208_v44 = vxor.u32 2147483648, %v2207_v20 }
 0x1c9   :  { %v2331_v24 = vsel %vm2320_vm1, nan, %v2330_v15 }
 0x1ca   :  { %v2364_v11 = vsel %vm2359_vm0, %v3457_v26, %v2331_v24  ;;  %v2209_v48 = vsel %vm2126_vm3, %v2208_v44, %v2207_v20  ;;  %v2218_v26 = vand.u32 3, %v2217_v42 }
 0x1cb   :  { %2370 = vst.msk [vmem:[#allocation7 + $0x20] sm:$0xff] %vm2369_vm2, %v2364_v11  ;;  %v2212_v41 = vsel %vm2125_vm4, %v3513_v59, %v2209_v48 }
 0x1cc   :  { %2818 = vcosq.f32 %v2212_v41  ;;  %vm2223_vm5 = vcmp.eq.s32.totalorder %v2218_v26, 2  ;;  %vm2220_vm6 = vcmp.eq.s32.totalorder %v2218_v26, 0  ;;  %vm2219_vm7 = vcmp.lt.s32.totalorder %v2218_v26, 2 }
 0x1cd   :  { %2820 = vsinq.f32 %v2212_v41 }
 0x1d6   :  { %v2819_v35 = vpop.eup %2818 }
 0x1d7   :  { %v2821_v32 = vpop.eup %2820  ;;  %v2224_v3 = vxor.u32 2147483648, %v2819_v35 }
 0x1d8   :  { %v2221_v4 = vxor.u32 2147483648, %v2821_v32 }
 0x1d9   :  { %v2225_v52 = vsel %vm2223_vm5, %v2224_v3, %v2821_v32 }
 0x1da   :  { %v2222_v27 = vsel %vm2220_vm6, %v2819_v35, %v2221_v4 }
 0x1db   :  { %v2226_v51 = vsel %vm2219_vm7, %v2222_v27, %v2225_v52 }
 0x1dc   :  { %v2227_v45 = vsel %vm2216_vm9, nan, %v2226_v51 }
 0x1dd   :  { %v2363_v12 = vsel %vm2358_vm8, %v3488_v25, %v2227_v45 }
 0x1de   :  { %2368 = vst [vmem:[#allocation7 + $0x18] sm:$0xff] %v2363_v12 }
 0x1df   :  { %2877 = shalt.err (!%p2874_p6)
}
 0x1e0   :  { %s2878_s20 = scalar_lea.hbm %s3740_s4, 640 }
 0x1e1   :  { %p2879_p7 = scmp.ne.s32.totalorder %s3740_s4, %s2878_s20  ;;  %p2882_p8 = scmp.lt.u32.totalorder %s2878_s20, %s3740_s4 }
 0x1e3   :  { %p2884_p9 = pnand %p2882_p8, %p2879_p7 }
 0x1e5   :  { %2887 = shalt.err (!%p2884_p9)
}
 0x1e6   :  { %2380 = dma.vmem_to_hbm [thread:$0]  %s2378_s16, 640, %s3740_s4, [#allocation4]  }
 0x1e7   :  { %2892 = dma.done.wait [#allocation4], 640  }
 0x1e8   :  { %2893 = vsyncadd [#allocation4], 4294966656 }
 0x1e9   :  { %2384 = vsyncpa [#allocation3], 1 }
 0x1ea   :  { %2385 = vsyncpa [#allocation6], 1 }
 0x1eb   :  { %2386 = vsyncpa [#allocation4], 1 }

</bundles_post_ra>
